<compile_context>
chip_gen: v5e
topology: v5e:2x2
jax: 0.10.0
libtpu: 0.0.40
codegen_flags: <defaults>
</compile_context>

<pallas_src>
import numpy as np
import jax
import jax.numpy as jnp
from jax.experimental import pallas as pl
from jax.experimental.pallas import tpu as pltpu


def make_peak_encoder_params(dim_model, min_wavelength=0.001, max_wavelength=10000.0,
                             key=None):
    """Build sin/cos wavelength terms (as in MassEncoder.__init__) and a
    deterministic Linear(1, dim_model, bias=False) weight."""
    n_sin = dim_model // 2
    n_cos = dim_model - n_sin
    if min_wavelength:
        base = min_wavelength / (2 * np.pi)
        scale = max_wavelength / min_wavelength
    else:
        base = 1.0
        scale = max_wavelength / (2 * np.pi)
    sin_term = base * scale ** (np.arange(0, n_sin, dtype=np.float32) / (n_sin - 1))
    cos_term = base * scale ** (np.arange(0, n_cos, dtype=np.float32) / (n_cos - 1))
    sin_term = jnp.asarray(sin_term, dtype=jnp.float32)
    cos_term = jnp.asarray(cos_term, dtype=jnp.float32)

    # nn.Linear(1, dim_model, bias=False): weight shape (dim_model, 1),
    # default init is uniform(-1/sqrt(fan_in), 1/sqrt(fan_in)) with fan_in=1.
    if key is None:
        key = jax.random.PRNGKey(0)
    w = jax.random.uniform(key, (dim_model,), dtype=jnp.float32, minval=-1.0, maxval=1.0)
    return sin_term, cos_term, w


def _peak_encoder_kernel(x_ref, c_ref, o_ref):
    # x_ref: (tile_n, 2)   -- col 0 = m/z, col 1 = intensity
    # c_ref: (8, Dp) fused constants:
    #        row 0 = 1/[sin_term | cos_term], row 1 = phase offset (0 | pi/2),
    #        row 2 = Linear(1, D, bias=False) weight, rows 3..7 = zero padding
    # o_ref: (tile_n, Dp)
    mz = x_ref[:, 0:1]            # (tile_n, 1)
    inten = x_ref[:, 1:2]         # (tile_n, 1)

    inv_div = c_ref[0:1, :]       # (1, Dp)
    offset = c_ref[1:2, :]        # (1, Dp)
    weight = c_ref[2:3, :]        # (1, Dp)

    # cos(x) == sin(x + pi/2): one transcendental over the whole (tile_n, Dp) tile,
    # and multiply-by-reciprocal instead of an f32 divide.
    phase = mz * inv_div + offset                     # (tile_n, Dp)
    encoded = jnp.sin(phase)

    # Linear(1, D, bias=False) on a length-1 feature == outer product.
    o_ref[...] = (encoded + inten * weight).astype(o_ref.dtype)


def peak_encoder(x, sin_term, cos_term, weight, *, out_dtype=jnp.float32,
                 vmem_buffer_budget=24 << 20):
    """x: (n_spectra, n_peaks, 2) float32 -> (n_spectra, n_peaks, dim_model)."""
    B, P, two = x.shape
    assert two == 2
    n_sin = int(sin_term.shape[0])
    n_cos = int(cos_term.shape[0])
    D = n_sin + n_cos
    Dp = ((D + 127) // 128) * 128          # lane-dense output (multiple of 128)
    out_itemsize = jnp.dtype(out_dtype).itemsize

    N = B * P

    def _round_up(a, m):
        return -(-a // m) * m

    # Sub-32-bit outputs pack two rows per sublane: keep the block a multiple of 16 rows
    # so it never drops below the packed (16, 128) minimum tile; f32 needs only 8.
    gran = 16 if out_itemsize < 4 else 8

    # Per-row VMEM bytes across the double-buffered blocks:
    #   input  (tile_n, 2) block: lane-padded to 128 lanes -> 128*4 B/row per buffer
    #   output (tile_n, Dp) block: Dp*out_itemsize B/row per buffer
    per_row_bytes = 2 * (128 * 4) + 2 * (Dp * out_itemsize)
    max_rows = max(gran, (vmem_buffer_budget // per_row_bytes) // gran * gran)

    # Keep >= ~4 grid steps so the "parallel" row axis splits across v7x's 2 TensorCores
    # with balanced work; large tiles still amortize the ~0.35 us per-grid-step overhead.
    tile_n = min(max_rows, max(gran, _round_up(pl.cdiv(N, 4), gran)))
    grid_n = pl.cdiv(N, tile_n)            # boundary block (if any) is clipped by Pallas

    x_flat = x.reshape(N, 2).astype(jnp.float32)   # contiguous reshape: free

    # Fused broadcast constants: one (8, Dp) block -> one spec, one tiny DMA.
    inv_div = jnp.concatenate([1.0 / sin_term, 1.0 / cos_term]).astype(jnp.float32)
    offset = jnp.concatenate([jnp.zeros((n_sin,), jnp.float32),
                              jnp.full((n_cos,), np.pi / 2, dtype=jnp.float32)])
    consts = jnp.zeros((8, Dp), jnp.float32)
    consts = consts.at[0, :D].set(inv_div)
    consts = consts.at[1, :D].set(offset)
    consts = consts.at[2, :D].set(weight.astype(jnp.float32))
    # Padded lanes (if D < Dp): inv=0, offset=0, w=0 -> sin(0)+0 = 0, dropped below.

    # Explicit scoped-VMEM limit: real double-buffered footprint + headroom, so bigger
    # tiles compile on v5e (16 MiB scoped default) and stay inside v7x's 64 MiB physical.
    buffers_bytes = (2 * tile_n * 128 * 4
                     + 2 * tile_n * Dp * out_itemsize
                     + 2 * 8 * Dp * 4)
    vmem_limit = int(min(48 << 20, max(32 << 20, buffers_bytes + (4 << 20))))

    out_flat = pl.pallas_call(
        _peak_encoder_kernel,
        out_shape=jax.ShapeDtypeStruct((N, Dp), out_dtype),
        grid_spec=pltpu.PrefetchScalarGridSpec(
            num_scalar_prefetch=0,
            grid=(grid_n,),
            in_specs=[
                pl.BlockSpec((tile_n, 2), lambda i: (i, 0)),
                pl.BlockSpec((8, Dp), lambda i: (0, 0)),
            ],
            out_specs=pl.BlockSpec((tile_n, Dp), lambda i: (i, 0)),
        ),
        compiler_params=pltpu.CompilerParams(
            # Row axis is embarrassingly parallel -> shards across v7x's 2 TensorCores.
            dimension_semantics=("parallel",),
            vmem_limit_bytes=vmem_limit),
    )(x_flat, consts)

    # No row pad/slice. Feature slice only if dim_model is not a multiple of 128
    # (not the depthcharge default); in that case lane-dense stores are kept and the
    # small feature-dim copy is accepted.
    out = out_flat if D == Dp else out_flat[:, :D]
    return out.reshape(B, P, D)


def peak_encoder_ref(x, sin_term, cos_term, weight):
    """Pure-JAX reference mirroring the PyTorch forward literally."""
    mz = x[:, :, 0:1]
    inten = x[:, :, 1:2]
    sin_mz = jnp.sin(mz / sin_term)          # (B, P, n_sin)
    cos_mz = jnp.cos(mz / cos_term)          # (B, P, n_cos)
    encoded = jnp.concatenate([sin_mz, cos_mz], axis=-1)
    intensity = inten * weight               # Linear(1, D, bias=False)
    return encoded + intensity


if __name__ == "__main__":
    dim_model = 128            # depthcharge default; multiple of 128 -> lane-dense output
    n_spectra, n_peaks = 2, 100

    key = jax.random.PRNGKey(0)
    k_mz, k_i, k_w = jax.random.split(key, 3)

    mz_vals = jax.random.uniform(k_mz, (n_spectra, n_peaks, 1),
                                 dtype=jnp.float32, minval=50.0, maxval=2000.0)
    intensities = jax.random.uniform(k_i, (n_spectra, n_peaks, 1),
                                     dtype=jnp.float32, minval=0.0, maxval=1.0)
    x = jnp.concatenate([mz_vals, intensities], axis=-1)    # (2, 100, 2)

    sin_term, cos_term, weight = make_peak_encoder_params(dim_model, key=k_w)

    # N=200 is not a multiple of tile_n here, so this exercises the clipped boundary
    # block path (no host-side pad, no output slice).
    out = peak_encoder(x, sin_term, cos_term, weight)
    out = jax.block_until_ready(out)
    assert out.shape == (n_spectra, n_peaks, dim_model)

    ref = peak_encoder_ref(x, sin_term, cos_term, weight)

    # Phase-aware comparison: the kernel evaluates sin(mz*inv_div + offset) in place of
    # divide + sin/cos. That is algebraically identical, but the f32 argument can shift
    # by a few ulps, and |sin(a+d)-sin(a)| <= |d|, so the allowed error scales with the
    # phase magnitude. For the shortest wavelengths (phase ~ 1e7) f32 sin carries no
    # significant digits in EITHER formulation (the PyTorch reference included), so those
    # lanes are inherently unverifiable; well-conditioned lanes are checked tightly.
    out_np = np.asarray(out)
    ref_np = np.asarray(ref)
    inv_all = np.concatenate([1.0 / np.asarray(sin_term), 1.0 / np.asarray(cos_term)])
    phase_mag = np.abs(np.asarray(x[:, :, 0:1])) * inv_all          # (B, P, D)
    tol = 1e-4 + 1e-5 * np.abs(ref_np) + 4e-6 * phase_mag
    err = np.abs(out_np - ref_np)
    assert np.all(err <= tol), f"max excess error {float((err - tol).max()):.3e}"
    assert np.all(np.isfinite(out_np))

    print("KERNEL_OK")
</pallas_src>

<mosaic_0001>
module attributes {stable_mosaic.version = 11 : i64} {
  func.func @_peak_encoder_kernel(%arg0: i32, %arg1: memref<56x2xf32, #tpu.memory_space<vmem>>, %arg2: memref<8x128xf32, #tpu.memory_space<vmem>>, %arg3: memref<56x128xf32, #tpu.memory_space<vmem>>) attributes {dimension_semantics = [#tpu.dimension_semantics<parallel>], iteration_bounds = array<i64: 4>, scalar_prefetch = 0 : i64, scratch_operands = 0 : i64, tpu.core_type = #tpu.core_type<tc>, window_params = [{transform_indices = @transform_0, window_bounds = array<i64: 56, 2>}, {pipeline_mode = #tpu.pipeline_mode<synchronous>, transform_indices = @transform_1, window_bounds = array<i64: 8, 128>}, {transform_indices = @transform_2, window_bounds = array<i64: 56, 128>}]} {
    %c0 = arith.constant 0 : index
    %c0_0 = arith.constant 0 : index
    %0 = vector.load %arg1[%c0, %c0_0] : memref<56x2xf32, #tpu.memory_space<vmem>>, vector<56x1xf32>
    %c0_1 = arith.constant 0 : index
    %c1 = arith.constant 1 : index
    %1 = vector.load %arg1[%c0_1, %c1] : memref<56x2xf32, #tpu.memory_space<vmem>>, vector<56x1xf32>
    %c0_2 = arith.constant 0 : index
    %c0_3 = arith.constant 0 : index
    %2 = vector.load %arg2[%c0_2, %c0_3] : memref<8x128xf32, #tpu.memory_space<vmem>>, vector<1x128xf32>
    %c1_4 = arith.constant 1 : index
    %c0_5 = arith.constant 0 : index
    %3 = vector.load %arg2[%c1_4, %c0_5] : memref<8x128xf32, #tpu.memory_space<vmem>>, vector<1x128xf32>
    %c2 = arith.constant 2 : index
    %c0_6 = arith.constant 0 : index
    %4 = vector.load %arg2[%c2, %c0_6] : memref<8x128xf32, #tpu.memory_space<vmem>>, vector<1x128xf32>
    %5 = vector.broadcast %0 : vector<56x1xf32> to vector<56x128xf32>
    %6 = vector.broadcast %2 : vector<1x128xf32> to vector<56x128xf32>
    %7 = arith.mulf %5, %6 : vector<56x128xf32>
    %8 = vector.broadcast %3 : vector<1x128xf32> to vector<56x128xf32>
    %9 = arith.addf %7, %8 : vector<56x128xf32>
    %10 = math.sin %9 : vector<56x128xf32>
    %11 = vector.broadcast %1 : vector<56x1xf32> to vector<56x128xf32>
    %12 = vector.broadcast %4 : vector<1x128xf32> to vector<56x128xf32>
    %13 = arith.mulf %11, %12 : vector<56x128xf32>
    %14 = arith.addf %10, %13 : vector<56x128xf32>
    %c0_7 = arith.constant 0 : index
    %c0_8 = arith.constant 0 : index
    %15 = vector.load %arg3[%c0_7, %c0_8] : memref<56x128xf32, #tpu.memory_space<vmem>>, vector<56x128xf32>
    tpu.vector_store %arg3[%c0_7, %c0_8], %14 {strides = array<i32>} : memref<56x128xf32, #tpu.memory_space<vmem>>, vector<56x128xf32>,
    return
  }
  func.func @transform_0(%arg0: i32) -> (i32, i32) {
    %c0_i32 = arith.constant 0 : i32
    %c0_i32_0 = arith.constant 0 : i32
    return %arg0, %c0_i32 : i32, i32
  }
  func.func @transform_1(%arg0: i32) -> (i32, i32) {
    %c0_i32 = arith.constant 0 : i32
    %c0_i32_0 = arith.constant 0 : i32
    %c0_i32_1 = arith.constant 0 : i32
    return %c0_i32, %c0_i32_0 : i32, i32
  }
  func.func @transform_2(%arg0: i32) -> (i32, i32) {
    %c0_i32 = arith.constant 0 : i32
    %c0_i32_0 = arith.constant 0 : i32
    return %arg0, %c0_i32 : i32, i32
  }
}

</mosaic_0001>

<bundles_post_ra>
// kernel: tpu_custom_call.1
= control target key start
LH: loop header
LB: loop body
LE: loop exit
PB: predicated region body
PF: predicated region fallthrough
CT: control target
= control target key end

     0   :  { %7 = vsyncpa [#allocation3], 0  ;;  %s2819_s0 = inlined_call_operand.vmem [shape: f32[200,2], index: 0, kind: input, shape index: {}]   ;;  %s2820_s1 = inlined_call_operand.vmem [shape: f32[8,128], index: 1, kind: input, shape index: {}]   ;;  %s2821_s2 = inlined_call_operand.hbm [shape: f32[200,128], index: 2, kind: output, shape index: {}]  }
   0x1   :  { %9 = vsyncpa [#allocation3 + $0x1], 0  ;;  %s1644_s9 = smov 0   ;;  %s1646_s10 = smov 0  }
   0x2   :  { %s1648_s11 = smov 0   ;;  %s1650_s12 = smov 0  }
   0x3 LB: > { %s1665_s13 = sadd.s32 4294967295, %s1616_s12   ;;  %s1450_s14 = sadd.s32 4294967294, %s1616_s12   ;;  %s1616_s12 = sphi %s1650_s12, %s2912_s12   ;;  %s1612_s11 = sphi %s1648_s11, %s2911_s11   ;;  %s1608_s10 = sphi %s1646_s10, %s2910_s10   ;;  %s1604_s9 = sphi %s1644_s9, %s2909_s9  }
   0x4   : > { %s1669_s15 = sadd.s32 1, %s1616_s12   ;;  %s69_s16 = sadd.s32 1, %s1612_s11 }
   0x5   : > { %s66_s17 = ssub.s32 %s1616_s12, %s1669_s15  ;;  %p79_p0 = scmp.ne.s32.totalorder %s1612_s11, %s1608_s10 }
   0x6   : > { %p67_p1 = scmp.eq.s32.totalorder %s66_s17, 0  ;;  %p80_p2 = scmp.eq.s32.totalorder %s1665_s13, 3 }
   0x7   : > { %p85_p3 = scmp.ne.s32.totalorder %s1608_s10, %s1604_s9  ;;  %p86_p4 = scmp.eq.s32.totalorder %s1450_s14, 3 }
   0x8   : > { %s1680_s18 = scalar_select %p67_p1, %s1612_s11, %s69_s16  }
   0x9   : > { %p1682_p5 = por %p80_p2, %p79_p0  ;;  %p1686_p6 = por %p86_p4, %p85_p3 }
   0xa   : > { %p1453_p7 = scmp.ge.s32.totalorder %s1616_s12, 1  ;;  %p124_p8 = scmp.lt.s32.totalorder %s1616_s12, 5 }
   0xc   : > { %p125_p9 = pnand %p1453_p7, %p124_p8 }
   0xe   : > { %128 = sbr.rel (%p125_p9) target bundleno = 483 (0x1e3), region = 28 }
  0x13   : > { %s1693_s21 = smul.u32 7, %s1665_s13  ;;  %v2834_v0 = vmov 0   ;;  %v1619_v8 = vmov 1   ;;  %v1706_v9 = vld [vmem:[%s2820_s1] ss:$0 sm:$0xff]  ;;  %s147_s3 = sand.u32 1, %s1608_s10  }
  0x14   : > { %1535 = vset.pattern.permute.xlu2 %v2834_v0  ;;  %1534 = vset.pattern.permute.xlu1 %v2834_v0  ;;  %v1711_v11 = vld [vmem:[%s2820_s1 + $0x1] ss:$0 sm:$0xff]  ;;  %v2830_v31 = vmov 920167782   ;;  %v1621_v35 = vmov 1326507024  }
  0x15   : > { %1533 = vset.pattern.permute.xlu0 %v2834_v0  ;;  %p155_p10 = scmp.lt.s32.totalorder %s1693_s21, 24  ;;  %v2826_v63 = vmov 2102212464   ;;  %s1484_s6 = smul.u32 56, %s147_s3 }
  0x16   : > { %s2758_s16 = scalar_lea.sflag [#allocation3], %s147_s3  ;;  %s1374_s17 = ssub.s32 (%p1682_p5), 25, %s1693_s21 }
  0x17   : > { %s156_s22 = scalar_select %p155_p10, %s1693_s21, 24 }
  0x18   : > { %s2263_s7 = scalar_lea.vmem [#allocation2], %s1484_s6  ;;  %p1375_p11 = scmp.lt.s32.totalorder (%p1682_p5), %s1374_s17, 7 }
  0x19   : > { %s1454_s23 = sshll.u32 %s156_s22, 3 }
  0x1a   : > { %s158_s26 = scalar_lea.vmem %s2819_s0, %s1454_s23 }
  0x1b   : > { %v173_v1 = vld [vmem:[%s158_s26 + $0x20] sm:$0xff]  ;;  %v171_v2 = vld [vmem:[%s158_s26 + $0x10] sm:$0xff]  ;;  %v174_v4 = vld [vmem:[%s158_s26 + $0x28] sm:$0xff] }
  0x1c   : > { %v169_v3 = vld [vmem:[%s158_s26] sm:$0xff]  ;;  %201 = vperm.xlu2 %1535, %v173_v1   ;;  %191 = vperm.xlu1 %1534, %v171_v2   ;;  %v172_v5 = vld [vmem:[%s158_s26 + $0x18] sm:$0xff]  ;;  %v170_v6 = vld [vmem:[%s158_s26 + $0x8] sm:$0xff] }
  0x1d   : > { %181 = vperm.xlu0 %1533, %v169_v3   ;;  %v175_v7 = vld [vmem:[%s158_s26 + $0x30] sm:$0xff] }
  0x24   : > { %206 = vperm.xlu2 %1535, %v174_v4   ;;  %196 = vperm.xlu1 %1534, %v172_v5  }
  0x25   : > { %186 = vperm.xlu0 %1533, %v170_v6  }
  0x2c   : > { %1536 = vset.pattern.permute.xlu1 %v1619_v8  ;;  %1537 = vset.pattern.permute.xlu2 %v1619_v8 }
  0x2d   : > { %211 = vperm.xlu0 %1533, %v175_v7   ;;  %1316 = vperm.xlu1 %1536, %v169_v3  }
  0x2e   : > { %1320 = vperm.xlu2 %1537, %v170_v6  }
  0x35   : > { %1328 = vperm.xlu1 %1536, %v172_v5   ;;  %1538 = vset.pattern.permute.xlu0 %v1619_v8 }
  0x36   : > { %1332 = vperm.xlu2 %1537, %v173_v1   ;;  %1324 = vperm.xlu0 %1538, %v171_v2  }
  0x3d   : > { %1336 = vperm.xlu1 %1536, %v174_v4  }
  0x3e   : > { %1340 = vperm.xlu2 %1537, %v175_v7  }
  0x76   : > { %v202_v10 = vpop.permute.xlu2 %201 }
  0x77   : > { %v219_v12 = vmul.f32 %v1706_v9, %v202_v10 }
  0x79   : > { %v1715_v13 = vadd.f32 %v1711_v11, %v219_v12 }
  0x7b   : > { %v853_v17 = vand.u32 2139095040, %v1715_v13 }
  0x7d   : > { %v854_v20 = vshrl.u32 %v853_v17, 23 }
  0x7e   : > { %v207_v14 = vpop.permute.xlu2 %206 }
  0x7f   : > { %v220_v15 = vmul.f32 %v1706_v9, %v207_v14  ;;  %v1467_v22 = vadd.s32 4294967169, %v854_v20 }
  0x81   : > { %v1719_v16 = vadd.f32 %v1711_v11, %v220_v15  ;;  %v860_v25 = vadd.s32 1, %v1467_v22 }
  0x83   : > { %v1008_v18 = vand.u32 2139095040, %v1719_v16  ;;  %vm861_vm1 = vcmp.gt.s32.totalorder %v860_v25, 0 }
  0x84   : > { %v862_v40 = vsel %vm861_vm1, %v860_v25, 0 }
  0x85   : > { %v1009_v19 = vshrl.u32 %v1008_v18, 23  ;;  %v1753_v48 = vand.u32 31, %v862_v40  ;;  %v1772_v61 = vshrl.u32 %v862_v40, 5 }
  0x87   : > { %v1470_v21 = vadd.s32 4294967169, %v1009_v19  ;;  %v1764_v55 = vsub.s32 32, %v1753_v48  ;;  %v876_v1 = vshll.u32 %v2826_v63, %v1753_v48  ;;  %v1792_v12 = vshll.u32 %v2830_v31, %v1753_v48 }
  0x88   : > { %vm885_vm4 = vcmp.lt.s32.totalorder %v1772_v61, 4 }
  0x89   : > { %v1015_v23 = vadd.s32 1, %v1470_v21  ;;  %v877_v5 = vshrl.u32 %v2830_v31, %v1764_v55  ;;  %v1802_v21 = vshrl.u32 %v1621_v35, %v1764_v55 }
  0x8b   : > { %vm1016_vm0 = vcmp.gt.s32.totalorder %v1015_v23, 0  ;;  %v1798_v20 = vor.u32 %v877_v5, %v876_v1  ;;  %v881_v40 = vor.u32 %v1802_v21, %v1792_v12  ;;  %v2824_v5 = vmov 2475754826  }
  0x8c   : > { %v1724_v24 = vsel %vm1016_vm0, %v1015_v23, 0 }
  0x8d   : > { %v1727_v26 = vand.u32 31, %v1724_v24 }
  0x8e   : > { %v192_v27 = vpop.permute.xlu1 %191 }
  0x8f   : > { %v217_v28 = vmul.f32 %v1706_v9, %v192_v27  ;;  %v182_v29 = vpop.permute.xlu0 %181  ;;  %v1731_v30 = vsub.s32 32, %v1727_v26  ;;  %v1735_v32 = vshll.u32 %v2830_v31, %v1727_v26 }
  0x90   : > { %v215_v34 = vmul.f32 %v1706_v9, %v182_v29 }
  0x91   : > { %v1738_v33 = vadd.f32 %v1711_v11, %v217_v28  ;;  %v1743_v36 = vshrl.u32 %v1621_v35, %v1731_v30  ;;  %v1032_v23 = vshrl.u32 %v2830_v31, %v1731_v30 }
  0x92   : > { %v1747_v38 = vadd.f32 %v1711_v11, %v215_v34 }
  0x93   : > { %2855 = vst [vmem:[#allocation5_spill] sm:$0xff] %v1738_v33  ;;  %v543_v37 = vand.u32 2139095040, %v1738_v33 }
  0x94   : > { %v233_v42 = vand.u32 2139095040, %v1747_v38  ;;  %v2822_v25 = vand.u32 2147483647, %v1747_v38 }
  0x95   : > { %v544_v41 = vshrl.u32 %v543_v37, 23 }
  0x96   : > { %v197_v43 = vpop.permute.xlu1 %196  ;;  %v234_v45 = vshrl.u32 %v233_v42, 23  ;;  %v1829_v42 = vshrl.u32 %v1724_v24, 5 }
  0x97   : > { %v1461_v44 = vadd.s32 4294967169, %v544_v41  ;;  %v218_v46 = vmul.f32 %v1706_v9, %v197_v43  ;;  %v187_v47 = vpop.permute.xlu0 %186  ;;  %v1826_v41 = vsel %vm885_vm4, %v1798_v20, 920167782 }
  0x98   : > { %v216_v49 = vmul.f32 %v1706_v9, %v187_v47  ;;  %v1455_v51 = vadd.s32 4294967169, %v234_v45  ;;  %v1841_v47 = vand.u32 8388607, %v2822_v25  ;;  %vm1040_vm7 = vcmp.lt.s32.totalorder %v1829_v42, 4 }
  0x99   : > { %v550_v50 = vadd.s32 1, %v1461_v44  ;;  %v1757_v52 = vadd.f32 %v1711_v11, %v218_v46 }
  0x9a   : > { %v1760_v53 = vadd.f32 %v1711_v11, %v216_v49  ;;  %v240_v57 = vadd.s32 1, %v1455_v51 }
  0x9b   : > { %vm551_vm2 = vcmp.gt.s32.totalorder %v550_v50, 0  ;;  %v698_v54 = vand.u32 2139095040, %v1757_v52 }
  0x9c   : > { %v1766_v56 = vsel %vm551_vm2, %v550_v50, 0  ;;  %v388_v58 = vand.u32 2139095040, %v1760_v53  ;;  %vm241_vm3 = vcmp.gt.s32.totalorder %v240_v57, 0  ;;  %v2823_v14 = vand.u32 2147483647, %v1760_v53 }
  0x9d   : > { %2856 = vst [vmem:[#allocation6_spill] sm:$0xff] %v1766_v56  ;;  %v1770_v59 = vand.u32 31, %v1766_v56  ;;  %v699_v60 = vshrl.u32 %v698_v54, 23  ;;  %v242_v17 = vsel %vm241_vm3, %v240_v57, 0 }
  0x9e   : > { %v389_v62 = vshrl.u32 %v388_v58, 23  ;;  %v1812_v27 = vand.u32 31, %v242_v17  ;;  %v392_v34 = vand.u32 8388607, %v2823_v14  ;;  %v1834_v45 = vshrl.u32 %v242_v17, 5 }
  0x9f   : > { %2857 = vst [vmem:[#allocation7_spill] sm:$0xff] %v1770_v59  ;;  %v1777_v2 = vsub.s32 32, %v1770_v59  ;;  %v1781_v3 = vshll.u32 %v2830_v31, %v1770_v59  ;;  %v212_v4 = vpop.permute.xlu0 %211  ;;  %v1464_v6 = vadd.s32 4294967169, %v699_v60 }
  0xa0   : > { %v1458_v7 = vadd.s32 4294967169, %v389_v62  ;;  %v221_v10 = vmul.f32 %v1706_v9, %v212_v4  ;;  %v1031_v9 = vshll.u32 %v2826_v63, %v1727_v26  ;;  %v1844_v49 = vsub.s32 32, %v1812_v27 }
  0xa1   : > { %2858 = vst [vmem:[#allocation8_spill] sm:$0xff] %v1777_v2  ;;  %v1787_v8 = vshrl.u32 %v1621_v35, %v1777_v2  ;;  %v705_v18 = vadd.s32 1, %v1464_v6  ;;  %v393_v51 = vor.u32 8388608, %v392_v34  ;;  %v2828_v34 = vmov 2131351028  }
  0xa2   : > { %2859 = vst [vmem:[#allocation9_spill] sm:$0xff] %v1781_v3  ;;  %v395_v19 = vadd.s32 1, %v1458_v7  ;;  %v1807_v22 = vadd.f32 %v1711_v11, %v221_v10  ;;  %v1832_v44 = vor.u32 %v1032_v23, %v1031_v9  ;;  %v256_v7 = vshll.u32 %v2826_v63, %v1812_v27 }
  0xa3   : > { %2860 = vst [vmem:[#allocation10_spill] sm:$0xff] %v1787_v8  ;;  %vm706_vm5 = vcmp.gt.s32.totalorder %v705_v18, 0  ;;  %v257_v15 = vshrl.u32 %v2830_v31, %v1844_v49  ;;  %vm265_vm13 = vcmp.lt.s32.totalorder %v1834_v45, 4  ;;  %vm262_vm2 = vcmp.lt.s32.totalorder %v1834_v45, 1 }
  0xa4   : > { %2861 = vst [vmem:[#allocation11_spill] sm:$0xff] %v1807_v22  ;;  %vm396_vm6 = vcmp.gt.s32.totalorder %v395_v19, 0  ;;  %v1814_v28 = vsel %vm706_vm5, %v705_v18, 0  ;;  %v1163_v43 = vand.u32 2139095040, %v1807_v22  ;;  %v2832_v18 = vmov 683565275  }
  0xa5   : > { %v397_v29 = vsel %vm396_vm6, %v395_v19, 0  ;;  %v1819_v37 = vand.u32 31, %v1814_v28  ;;  %2862 = vst [vmem:[#allocation12_spill] sm:$0xff] %v1832_v44  ;;  %v2867_v22 = vmov 0   ;;  %vm264_vm3 = vcmp.lt.s32.totalorder %v1834_v45, 3 }
  0xa6   : > { %v399_v11 = vand.u32 31, %v397_v29  ;;  %v1846_v50 = vshrl.u32 %v397_v29, 5  ;;  %v1164_v60 = vshrl.u32 %v1163_v43, 23  ;;  %vm263_vm5 = vcmp.lt.s32.totalorder %v1834_v45, 2 }
  0xa7   : > { %v1837_v46 = vsub.s32 32, %v1819_v37  ;;  %v1850_v54 = vshll.u32 %v2830_v31, %v1819_v37 }
  0xa8   : > { %v400_v24 = vsub.s32 32, %v399_v11  ;;  %v411_v58 = vshll.u32 %v2826_v63, %v399_v11  ;;  %v414_v1 = vshll.u32 %v2830_v31, %v399_v11  ;;  %v1473_v17 = vadd.s32 4294967169, %v1164_v60 }
  0xa9   : > { %v1854_v57 = vshrl.u32 %v1621_v35, %v1837_v46  ;;  %v402_v19 = vshll.u32 %v2832_v18, %v399_v11  ;;  %v405_v29 = vshll.u32 %v2824_v5, %v399_v11  ;;  %vm420_vm8 = vcmp.lt.s32.totalorder %v1846_v50, 4 }
  0xaa   : > { %v412_v62 = vshrl.u32 %v2830_v31, %v400_v24  ;;  %v415_v4 = vshrl.u32 %v1621_v35, %v400_v24  ;;  %v403_v6 = vshrl.u32 %v2824_v5, %v400_v24  ;;  %v406_v43 = vshrl.u32 %v2828_v34, %v400_v24 }
  0xab   : > { %v1170_v25 = vadd.s32 1, %v1473_v17  ;;  %v408_v39 = vshll.u32 %v2828_v34, %v399_v11  ;;  %vm417_vm10 = vcmp.lt.s32.totalorder %v1846_v50, 1  ;;  %vm419_vm11 = vcmp.lt.s32.totalorder %v1846_v50, 3 }
  0xac   : > { %v413_v9 = vor.u32 %v412_v62, %v411_v58  ;;  %v416_v23 = vor.u32 %v415_v4, %v414_v1  ;;  %v404_v14 = vor.u32 %v403_v6, %v402_v19  ;;  %v407_v10 = vor.u32 %v406_v43, %v405_v29 }
  0xad   : > { %v409_v58 = vshrl.u32 %v2826_v63, %v400_v24  ;;  %v260_v62 = vshrl.u32 %v1621_v35, %v1844_v49  ;;  %vm1171_vm9 = vcmp.gt.s32.totalorder %v1170_v25, 0  ;;  %v1880_v4 = vshll.u32 %v393_v51, 8 }
  0xae   : > { %v430_v60 = vsel %vm420_vm8, %v416_v23, 1326507024  ;;  %v426_v1 = vsel %vm420_vm8, %v413_v9, 920167782  ;;  %v1882_v5 = vsel %vm1171_vm9, %v1170_v25, 0  ;;  %v259_v11 = vshll.u32 %v2830_v31, %v1812_v27 }
  0xaf   : > { %v410_v6 = vor.u32 %v409_v58, %v408_v39  ;;  %v1889_v17 = vand.u32 31, %v1882_v5  ;;  %v425_v19 = vsel %vm417_vm10, %v404_v14, %v407_v10  ;;  %v431_v23 = vsel %vm419_vm11, %v413_v9, %v430_v60 }
  0xb0   : > { %v1893_v29 = vor.u32 %v257_v15, %v256_v7  ;;  %v401_v25 = vshrl.u32 %v2832_v18, %v400_v24  ;;  %v261_v43 = vor.u32 %v260_v62, %v259_v11  ;;  %vm418_vm12 = vcmp.lt.s32.totalorder %v1846_v50, 2 }
  0xb1   : > { %2863 = vst [vmem:[#allocation13_spill] sm:$0xff] %v1889_v17  ;;  %v427_v39 = vsel %vm419_vm11, %v410_v6, %v426_v1  ;;  %v429_v51 = vsel %vm417_vm10, %v407_v10, %v410_v6  ;;  %v1899_v58 = vsub.s32 32, %v1889_v17  ;;  %v422_v63 = vsel %vm420_vm8, %v410_v6, 2102212464 }
  0xb2   : > { %v421_v34 = vsel %vm417_vm10, %v401_v25, %v404_v14  ;;  %v428_v15 = vsel %vm418_vm12, %v425_v19, %v427_v39  ;;  %v432_v24 = vsel %vm418_vm12, %v429_v51, %v431_v23  ;;  %v434_v7 = vand.u32 65535, %v1880_v4 }
  0xb3   : > { %v1911_v9 = vshll.u32 %v2830_v31, %v1889_v17  ;;  %v1915_v60 = vshrl.u32 %v1621_v35, %v1899_v58  ;;  %v435_v62 = vshrl.u32 %v1880_v4, 16  ;;  %v436_v1 = vand.u32 65535, %v432_v24 }
  0xb4   : > { %v423_v14 = vsel %vm419_vm11, %v407_v10, %v422_v63  ;;  %v437_v6 = vshrl.u32 %v432_v24, 16  ;;  %v458_v11 = vand.u32 65535, %v428_v15  ;;  %v459_v19 = vshrl.u32 %v428_v15, 16 }
  0xb5   : > { %2864 = vst [vmem:[#allocation14_spill] sm:$0xff] %v1911_v9  ;;  %v1925_v23 = vsel %vm885_vm4, %v881_v40, 1326507024  ;;  %v1930_v35 = vsel %vm1040_vm7, %v1832_v44, 920167782  ;;  %v440_v39 = vmul.u32 %v436_v1, %v435_v62  ;;  %v238_v51 = vor.u32 8388608, %v1841_v47 }
  0xb6   : > { %2865 = vst [vmem:[#allocation15_spill] sm:$0xff] %v1915_v60  ;;  %v439_v63 = vmul.u32 %v437_v6, %v434_v7  ;;  %v461_v10 = vmul.u32 %v459_v19, %v434_v7  ;;  %v271_v12 = vsel %vm265_vm13, %v1893_v29, 920167782  ;;  %v275_v21 = vsel %vm265_vm13, %v261_v43, 1326507024 }
  0xb7   : > { %2866 = vst [vmem:[#allocation16_spill] sm:$0xff] %v1930_v35  ;;  %v1943_v40 = vsel %vm418_vm12, %v421_v34, %v423_v14  ;;  %v438_v15 = vmul.u32 %v436_v1, %v434_v7  ;;  %v441_v24 = vmul.u32 %v437_v6, %v435_v62  ;;  %v460_v31 = vmul.u32 %v458_v11, %v434_v7 }
  0xb8   : > { %v442_v25 = vshll.u32 %v439_v63, 16  ;;  %v462_v18 = vmul.u32 %v458_v11, %v435_v62  ;;  %v443_v0 = vshrl.u32 %v439_v63, 16  ;;  %v444_v33 = vshll.u32 %v440_v39, 16 }
  0xb9   : > { %v445_v3 = vshrl.u32 %v440_v39, 16  ;;  %v464_v47 = vshll.u32 %v461_v10, 16  ;;  %v463_v9 = vmul.u32 %v459_v19, %v435_v62  ;;  %v2868_v50 = vmov 2475754826  }
  0xba   : > { %vm446_vm14 = vc.u32 %v438_v15, %v442_v25  ;;  %v448_v8 = vadd.s32 %v442_v25, %v438_v15  ;;  %v466_v60 = vshll.u32 %v462_v18, 16  ;;  %v248_v34 = vshrl.u32 %v2868_v50, %v1844_v49 }
  0xbb   : > { %v447_v56 = vsel %vm446_vm14, 1, %v2867_v22  ;;  %vm468_vm15 = vc.u32 %v460_v31, %v464_v47  ;;  %v470_v43 = vadd.s32 %v464_v47, %v460_v31  ;;  %v2869_v14 = vmov 683565275  }
  0xbc   : > { %v449_v1 = vadd.s32 %v447_v56, %v441_v24  ;;  %vm450_vm0 = vc.u32 %v448_v8, %v444_v33  ;;  %v469_v7 = vsel %vm468_vm15, 1, %v2867_v22  ;;  %v247_v6 = vshll.u32 %v2869_v14, %v1812_v27 }
  0xbd   : > { %v451_v11 = vsel %vm450_vm0, 1, %v2867_v22  ;;  %v471_v39 = vadd.s32 %v469_v7, %v463_v9  ;;  %vm472_vm1 = vc.u32 %v470_v43, %v466_v60  ;;  %v250_v62 = vshll.u32 %v2868_v50, %v1812_v27 }
  0xbe   : > { %v453_v19 = vadd.s32 %v451_v11, %v449_v1  ;;  %v473_v31 = vsel %vm472_vm1, 1, %v2867_v22  ;;  %v1955_v25 = vor.u32 %v248_v34, %v247_v6  ;;  %v2870_v56 = vmov 2131351028  }
  0xbf   : > { %v251_v33 = vshrl.u32 %v2870_v56, %v1844_v49  ;;  %v465_v8 = vshrl.u32 %v461_v10, 16  ;;  %v475_v63 = vadd.s32 %v473_v31, %v471_v39  ;;  %v253_v15 = vshll.u32 %v2870_v56, %v1812_v27 }
  0xc0   : > { %v2871_v24 = vmov 2102212464   ;;  %v454_v47 = vadd.s32 %v453_v19, %v443_v0  ;;  %v467_v7 = vshrl.u32 %v462_v18, 16  ;;  %v1963_v35 = vadd.s32 %v470_v43, %v466_v60 }
  0xc1   : > { %v254_v9 = vshrl.u32 %v2871_v24, %v1844_v49  ;;  %v1965_v1 = vor.u32 %v251_v33, %v250_v62  ;;  %v476_v11 = vadd.s32 %v475_v63, %v465_v8  ;;  %v276_v0 = vsel %vm264_vm3, %v1893_v29, %v275_v21 }
  0xc2   : > { %v1969_v10 = vadd.s32 %v454_v47, %v445_v3  ;;  %v1978_v18 = vshll.u32 %v238_v51, 8  ;;  %v1987_v6 = vshrl.u32 %v1814_v28, 5  ;;  %v2872_v39 = vmov 920167782  }
  0xc3   : > { %v255_v34 = vor.u32 %v254_v9, %v253_v15  ;;  %v270_v27 = vsel %vm262_vm2, %v1955_v25, %v1965_v1  ;;  %v477_v60 = vadd.s32 %v476_v11, %v467_v7  ;;  %v722_v62 = vshrl.u32 %v2872_v39, %v1837_v46 }
  0xc4   : > { %vm480_vm6 = vc.u32 %v1969_v10, %v1963_v35  ;;  %v478_v51 = vmul.u32 %v1880_v4, %v1943_v40  ;;  %v279_v19 = vand.u32 65535, %v1978_v18  ;;  %v280_v28 = vshrl.u32 %v1978_v18, 16 }
  0xc5   : > { %v272_v43 = vsel %vm264_vm3, %v255_v34, %v271_v12  ;;  %v274_v3 = vsel %vm262_vm2, %v1965_v1, %v255_v34  ;;  %v481_v12 = vadd.s32 1, %v477_v60  ;;  %v2873_v63 = vor.u32 %v1743_v36, %v1735_v32 }
  0xc6   : > { %v273_v29 = vsel %vm263_vm5, %v270_v27, %v272_v43  ;;  %v277_v21 = vsel %vm263_vm5, %v274_v3, %v276_v0  ;;  %v2010_v4 = vshll.u32 %v2871_v24, %v1770_v59  ;;  %v721_v47 = vshll.u32 %v2871_v24, %v1819_v37 }
  0xc7   : > { %v281_v31 = vand.u32 65535, %v277_v21  ;;  %v282_v33 = vshrl.u32 %v277_v21, 16  ;;  %v303_v8 = vand.u32 65535, %v273_v29  ;;  %v2006_v15 = vsel %vm1040_vm7, %v2873_v63, 1326507024 }
  0xc8   : > { %2874 = vst [vmem:[#allocation17_spill] sm:$0xff] %v2010_v4  ;;  %v482_v40 = vsel %vm480_vm6, %v481_v12, %v477_v60  ;;  %v304_v9 = vshrl.u32 %v273_v29, 16  ;;  %v2016_v0 = vshrl.u32 %v2872_v39, %v1777_v2  ;;  %vm730_vm8 = vcmp.lt.s32.totalorder %v1987_v6, 4 }
  0xc9   : > { %v483_v7 = vadd.s32 %v482_v40, %v478_v51  ;;  %v284_v11 = vmul.u32 %v282_v33, %v279_v19  ;;  %v285_v27 = vmul.u32 %v281_v31, %v280_v28  ;;  %v307_v36 = vmul.u32 %v303_v8, %v280_v28 }
  0xca   : > { %2875 = vst [vmem:[#allocation18_spill] sm:$0xff] %v2016_v0  ;;  %v306_v32 = vmul.u32 %v304_v9, %v279_v19  ;;  %v2019_v43 = vor.u32 %v722_v62, %v721_v47  ;;  %v283_v21 = vmul.u32 %v281_v31, %v279_v19  ;;  %v246_v29 = vshrl.u32 %v2869_v14, %v1844_v49 }
  0xcb   : > { %v484_v3 = vadd.s32 536870912, %v483_v7  ;;  %v287_v60 = vshll.u32 %v284_v11, 16  ;;  %v286_v12 = vmul.u32 %v282_v33, %v280_v28  ;;  %v305_v51 = vmul.u32 %v303_v8, %v279_v19 }
  0xcc   : > { %v309_v63 = vshll.u32 %v306_v32, 16  ;;  %v289_v59 = vshll.u32 %v285_v27, 16  ;;  %v311_v4 = vshll.u32 %v307_v36, 16  ;;  %v308_v44 = vmul.u32 %v304_v9, %v280_v28 }
  0xcd   : > { %v2023_v40 = vshrl.u32 %v484_v3, 30  ;;  %vm291_vm9 = vc.u32 %v283_v21, %v287_v60  ;;  %v293_v2 = vadd.s32 %v287_v60, %v283_v21  ;;  %v267_v49 = vsel %vm265_vm13, %v255_v34, 2102212464 }
  0xce   : > { %v292_v0 = vsel %vm291_vm9, 1, %v2867_v22  ;;  %vm313_vm10 = vc.u32 %v305_v51, %v309_v63  ;;  %v315_v62 = vadd.s32 %v309_v63, %v305_v51  ;;  %v288_v3 = vshrl.u32 %v284_v11, 16 }
  0xcf   : > { %v486_v47 = vshll.u32 %v2023_v40, 30  ;;  %v294_v31 = vadd.s32 %v292_v0, %v286_v12  ;;  %vm295_vm11 = vc.u32 %v293_v2, %v289_v59  ;;  %v314_v33 = vsel %vm313_vm10, 1, %v2867_v22 }
  0xd0   : > { %v296_v19 = vsel %vm295_vm11, 1, %v2867_v22  ;;  %vm317_vm12 = vc.u32 %v315_v62, %v311_v4  ;;  %v316_v60 = vadd.s32 %v314_v33, %v308_v44  ;;  %v2036_v51 = vsel %vm730_vm8, %v2019_v43, 920167782 }
  0xd1   : > { %v2031_v8 = vsub.s32 %v483_v7, %v486_v47  ;;  %v298_v21 = vadd.s32 %v296_v19, %v294_v31  ;;  %v266_v59 = vsel %vm262_vm2, %v246_v29, %v1955_v25  ;;  %v318_v2 = vsel %vm317_vm12, 1, %v2867_v22 }
  0xd2   : > { %v2850_v34 = vand.u32 2147483647, %v1715_v13  ;;  %v290_v9 = vshrl.u32 %v285_v27, 16  ;;  %vm387_vm14 = vcmp.lt.s32.totalorder %v1760_v53, 0  ;;  %v268_v44 = vsel %vm264_vm3, %v1965_v1, %v267_v49 }
  0xd3   : > { %vm488_vm13 = vcmp.lt.s32.totalorder %v2031_v8, 0  ;;  %v489_v28 = vsub.s32 0, %v2031_v8  ;;  %v299_v7 = vadd.s32 %v298_v21, %v288_v3  ;;  %v310_v11 = vshrl.u32 %v306_v32, 16 }
  0xd4   : > { %v312_v0 = vshrl.u32 %v307_v36, 16  ;;  %v320_v12 = vadd.s32 %v318_v2, %v316_v60  ;;  %v867_v63 = vshll.u32 %v2869_v14, %v1753_v48  ;;  %v868_v27 = vshrl.u32 %v2868_v50, %v1764_v55 }
  0xd5   : > { %v490_v25 = vsel %vm488_vm13, %v489_v28, %v2031_v8  ;;  %v2050_v29 = vadd.s32 %v299_v7, %v290_v9  ;;  %v870_v19 = vshll.u32 %v2868_v50, %v1753_v48  ;;  %v871_v1 = vshrl.u32 %v2870_v56, %v1764_v55 }
  0xd6   : > { %v491_v47 = vclz %v490_v25  ;;  %v321_v31 = vadd.s32 %v320_v12, %v310_v11  ;;  %v2876_v32 = vor.u32 %v1854_v57, %v1850_v54  ;;  %v2877_v49 = vand.u32 2147483647, %v1760_v53 }
  0xd7   : > { %v479_v3 = vadd.s32 %v1963_v35, %v1969_v10  ;;  %v2075_v21 = vadd.s32 %v315_v62, %v311_v4  ;;  %v857_v60 = vand.u32 8388607, %v2850_v34  ;;  %v509_v54 = vsub.s32 4, %v2023_v40 }
  0xd8   : > { %v2065_v36 = vsel %vm730_vm8, %v2876_v32, 1326507024  ;;  %vm2069_vm15 = vcmp.le.f32.partialorder %v2877_v49, 0.7853982  ;;  %v1459_v2 = vadd.s32 4294967294, %v491_v47  ;;  %v269_v57 = vsel %vm263_vm5, %v266_v59, %v268_v44 }
  0xd9   : > { %v322_v28 = vadd.s32 %v321_v31, %v312_v0  ;;  %vm325_vm0 = vc.u32 %v2050_v29, %v2075_v21  ;;  %v2084_v9 = vor.u32 %v871_v1, %v870_v19  ;;  %v873_v35 = vshll.u32 %v2870_v56, %v1753_v48 }
  0xda   : > { %v874_v10 = vshrl.u32 %v2871_v24, %v1764_v55  ;;  %vm1460_vm1 = vcmp.lt.s32.totalorder %v1459_v2, 0  ;;  %v2090_v62 = vor.u32 %v868_v27, %v867_v63  ;;  %vm882_vm2 = vcmp.lt.s32.totalorder %v1772_v61, 1 }
  0xdb   : > { %v326_v4 = vadd.s32 1, %v322_v28  ;;  %v494_v45 = vsel %vm1460_vm1, 0, %v1459_v2  ;;  %v323_v59 = vmul.u32 %v1978_v18, %v269_v57  ;;  %v858_v7 = vor.u32 8388608, %v857_v60 }
  0xdc   : > { %v875_v44 = vor.u32 %v874_v10, %v873_v35  ;;  %v495_v11 = vsub.s32 32, %v494_v45  ;;  %v499_v0 = vsub.s32 4294967266, %v494_v45  ;;  %vm884_vm3 = vcmp.lt.s32.totalorder %v1772_v61, 3 }
  0xdd   : > { %v327_v12 = vsel %vm325_vm0, %v326_v4, %v322_v28  ;;  %v510_v48 = vsel %vm387_vm14, %v509_v54, %v2023_v40  ;;  %vm883_vm5 = vcmp.lt.s32.totalorder %v1772_v61, 2  ;;  %v496_v18 = vshll.u32 %v2031_v8, %v494_v45  ;;  %v2201_v61 = vld [vmem:[%s2820_s1 + $0x2] ss:$0 sm:$0xff] }
  0xde   : > { %v328_v25 = vadd.s32 %v327_v12, %v323_v59  ;;  %v894_v63 = vsel %vm882_vm2, %v2084_v9, %v875_v44  ;;  %v497_v27 = vshrl.u32 %v479_v3, %v495_v11  ;;  %v500_v47 = vadd.s32 127, %v499_v0 }
  0xdf   : > { %v890_v31 = vsel %vm882_vm2, %v2090_v62, %v2084_v9  ;;  %v892_v40 = vsel %vm884_vm3, %v875_v44, %v1826_v41  ;;  %v896_v1 = vsel %vm884_vm3, %v1798_v20, %v1925_v23  ;;  %v2114_v32 = vshll.u32 %v858_v7, 8 }
  0xe0   : > { %v329_v19 = vadd.s32 536870912, %v328_v25  ;;  %v498_v8 = vor.u32 %v497_v27, %v496_v18  ;;  %v501_v49 = vshll.u32 %v500_v47, 23  ;;  %v512_v3 = vsel %vm2069_vm15, 0, %v510_v48 }
  0xe1   : > { %v897_v60 = vsel %vm883_vm5, %v894_v63, %v896_v1  ;;  %v899_v54 = vand.u32 65535, %v2114_v32  ;;  %v900_v41 = vshrl.u32 %v2114_v32, 16  ;;  %v2125_v28 = vshrl.u32 %v1882_v5, 5 }
  0xe2   : > { %v2120_v2 = vshrl.u32 %v329_v19, 30  ;;  %v901_v57 = vand.u32 65535, %v897_v60  ;;  %v502_v20 = vor.u32 4788187, %v501_v49  ;;  %v893_v23 = vsel %vm883_vm5, %v890_v31, %v892_v40 }
  0xe3   : > { %v902_v35 = vshrl.u32 %v897_v60, 16  ;;  %v2131_v10 = vshll.u32 %v2871_v24, %v1889_v17  ;;  %v529_v4 = vadd.s32 3, %v512_v3  ;;  %v505_v11 = vcvt.s32.f32 %v498_v8 }
  0xe4   : > { %v331_v45 = vshll.u32 %v2120_v2, 30  ;;  %v2134_v59 = vmul.u32 %v901_v57, %v900_v41  ;;  %v503_v7 = vand.u32 2147483647, %v502_v20  ;;  %v903_v0 = vmul.u32 %v901_v57, %v899_v54 }
  0xe5   : > { %v904_v12 = vmul.u32 %v902_v35, %v899_v54  ;;  %v866_v48 = vshrl.u32 %v2869_v14, %v1764_v55  ;;  %v923_v63 = vand.u32 65535, %v893_v23  ;;  %v924_v18 = vshrl.u32 %v893_v23, 16 }
  0xe6   : > { %v2136_v5 = vsub.s32 %v328_v25, %v331_v45  ;;  %v506_v27 = vmul.f32 %v505_v11, %v503_v7  ;;  %v906_v47 = vmul.u32 %v902_v35, %v900_v41  ;;  %v909_v19 = vshll.u32 %v2134_v59, 16 }
  0xe7   : > { %v907_v31 = vshll.u32 %v904_v12, 16  ;;  %v2141_v40 = vand.u32 3, %v529_v4  ;;  %v324_v1 = vadd.s32 %v2075_v21, %v2050_v29  ;;  %v887_v55 = vsel %vm885_vm4, %v875_v44, 2102212464 }
  0xe8   : > { %vm333_vm6 = vcmp.lt.s32.totalorder %v2136_v5, 0  ;;  %v334_v25 = vsub.s32 0, %v2136_v5  ;;  %v507_v8 = vxor.u32 2147483648, %v506_v27  ;;  %v926_v57 = vmul.u32 %v924_v18, %v899_v54 }
  0xe9   : > { %vm911_vm9 = vc.u32 %v903_v0, %v907_v31  ;;  %v913_v49 = vadd.s32 %v907_v31, %v903_v0  ;;  %v2151_v20 = vmul.u32 %v923_v63, %v900_v41  ;;  %vm232_vm10 = vcmp.lt.s32.totalorder %v1747_v38, 0 }
  0xea   : > { %v335_v3 = vsel %vm333_vm6, %v334_v25, %v2136_v5  ;;  %v912_v60 = vsel %vm911_vm9, 1, %v2867_v22  ;;  %v508_v29 = vsel %vm387_vm14, %v507_v8, %v506_v27  ;;  %v886_v35 = vsel %vm882_vm2, %v866_v48, %v2090_v62 }
  0xeb   : > { %v336_v21 = vclz %v335_v3  ;;  %v914_v23 = vadd.s32 %v912_v60, %v906_v47  ;;  %vm915_vm11 = vc.u32 %v913_v49, %v909_v19  ;;  %v2159_v44 = vsel %vm2069_vm15, %v1760_v53, %v508_v29 }
  0xec   : > { %v888_v4 = vsel %vm884_vm3, %v2084_v9, %v887_v55  ;;  %v925_v45 = vmul.u32 %v923_v63, %v899_v54  ;;  %v513_v7 = vmul.f32 %v2159_v44, %v2159_v44  ;;  %v354_v0 = vsub.s32 4, %v2120_v2 }
  0xed   : > { %v1456_v11 = vadd.s32 4294967294, %v336_v21  ;;  %v916_v27 = vsel %vm915_vm11, 1, %v2867_v22  ;;  %v908_v33 = vshrl.u32 %v904_v12, 16  ;;  %v929_v31 = vshll.u32 %v926_v57, 16 }
  0xee   : > { %v918_v47 = vadd.s32 %v916_v27, %v914_v23  ;;  %v931_v19 = vshll.u32 %v2151_v20, 16  ;;  %v514_v25 = vmul.f32 -0.001358992, %v513_v7  ;;  %v521_v62 = vmul.f32 -0.00019511016, %v513_v7 }
  0xef   : > { %v2880_v48 = vand.u32 2147483647, %v1747_v38  ;;  %vm1457_vm12 = vcmp.lt.s32.totalorder %v1456_v11, 0  ;;  %v928_v54 = vmul.u32 %v924_v18, %v900_v41  ;;  %v910_v8 = vshrl.u32 %v2134_v59, 16 }
  0xf0   : > { %v339_v63 = vsel %vm1457_vm12, 0, %v1456_v11  ;;  %vm933_vm13 = vc.u32 %v925_v45, %v929_v31  ;;  %v935_v55 = vadd.s32 %v929_v31, %v925_v45  ;;  %v515_v12 = vadd.f32 0.041655596, %v514_v25 }
  0xf1   : > { %vm2174_vm4 = vcmp.le.f32.partialorder %v2880_v48, 0.7853982  ;;  %v522_v49 = vadd.f32 0.008332121, %v521_v62  ;;  %v340_v3 = vsub.s32 32, %v339_v63  ;;  %v930_v60 = vshrl.u32 %v926_v57, 16 }
  0xf2   : > { %v344_v29 = vsub.s32 4294967266, %v339_v63  ;;  %v919_v21 = vadd.s32 %v918_v47, %v908_v33  ;;  %v934_v23 = vsel %vm933_vm13, 1, %v2867_v22  ;;  %vm937_vm14 = vc.u32 %v935_v55, %v931_v19 }
  0xf3   : > { %v516_v27 = vmul.f32 %v515_v12, %v513_v7  ;;  %v523_v48 = vmul.f32 %v522_v49, %v513_v7  ;;  %v342_v34 = vshrl.u32 %v324_v1, %v340_v3  ;;  %v936_v17 = vadd.s32 %v934_v23, %v928_v54 }
  0xf4   : > { %v341_v41 = vshll.u32 %v2136_v5, %v339_v63  ;;  %v345_v18 = vadd.s32 127, %v344_v29  ;;  %v355_v59 = vsel %vm232_vm10, %v354_v0, %v2120_v2  ;;  %v938_v45 = vsel %vm937_vm14, 1, %v2867_v22 }
  0xf5   : > { %v517_v11 = vadd.f32 -0.4999988, %v516_v27  ;;  %v524_v57 = vadd.f32 -0.16666654, %v523_v48  ;;  %v932_v33 = vshrl.u32 %v2151_v20, 16  ;;  %v940_v47 = vadd.s32 %v938_v45, %v936_v17 }
  0xf6   : > { %v343_v31 = vor.u32 %v342_v34, %v341_v41  ;;  %v346_v25 = vshll.u32 %v345_v18, 23  ;;  %v2186_v62 = vadd.s32 %v919_v21, %v910_v8  ;;  %v2188_v1 = vadd.s32 %v935_v55, %v931_v19  ;;  %v1321_v8 = vpop.permute.xlu2 %1320 }
  0xf7   : > { %v518_v54 = vmul.f32 %v517_v11, %v513_v7  ;;  %v525_v5 = vmul.f32 %v524_v57, %v513_v7  ;;  %v889_v63 = vsel %vm883_vm5, %v886_v35, %v888_v4  ;;  %v941_v12 = vadd.s32 %v940_v47, %v930_v60 }
  0xf8   : > { %vm528_vm15 = vweird.f32 %v1760_v53  ;;  %vm531_vm0 = vcmp.lt.s32.totalorder %v2141_v40, 2  ;;  %vm532_vm1 = vcmp.eq.s32.totalorder %v2141_v40, 0  ;;  %v347_v2 = vor.u32 4788187, %v346_v25 }
  0xf9   : > { %v357_v17 = vsel %vm2174_vm4, 0, %v355_v59  ;;  %v519_v34 = vadd.f32 1.0, %v518_v54  ;;  %v526_v20 = vadd.f32 1.0, %v525_v5  ;;  %v942_v0 = vadd.s32 %v941_v12, %v932_v33 }
  0xfa   : > { %v695_v19 = vand.u32 2147483647, %v1757_v52  ;;  %v348_v35 = vand.u32 2147483647, %v347_v2  ;;  %v350_v4 = vcvt.s32.f32 %v343_v31  ;;  %v943_v7 = vmul.u32 %v2114_v32, %v889_v63 }
  0xfb   : > { %vm945_vm2 = vc.u32 %v2186_v62, %v2188_v1  ;;  %v527_v55 = vmul.f32 %v526_v20, %v2159_v44  ;;  %vm535_vm3 = vcmp.eq.s32.totalorder %v2141_v40, 2  ;;  %v536_v49 = vxor.u32 2147483648, %v519_v34 }
  0xfc   : > { %v946_v3 = vadd.s32 1, %v942_v0  ;;  %v1345_v60 = vmul.f32 %v2201_v61, %v1321_v8  ;;  %v351_v29 = vmul.f32 %v350_v4, %v348_v35  ;;  %v374_v21 = vadd.s32 3, %v357_v17 }
  0xfd   : > { %v716_v23 = vshrl.u32 %v2870_v56, %v1837_v46  ;;  %v533_v27 = vxor.u32 2147483648, %v527_v55  ;;  %v702_v48 = vand.u32 8388607, %v695_v19  ;;  %v715_v44 = vshll.u32 %v2868_v50, %v1819_v37 }
  0xfe   : > { %v947_v32 = vsel %vm945_vm2, %v946_v3, %v942_v0  ;;  %v352_v41 = vxor.u32 2147483648, %v351_v29  ;;  %v718_v59 = vshll.u32 %v2870_v56, %v1819_v37  ;;  %v719_v45 = vshrl.u32 %v2871_v24, %v1837_v46 }
  0xff   : > { %v948_v18 = vadd.s32 %v947_v32, %v943_v7  ;;  %v534_v11 = vsel %vm532_vm1, %v519_v34, %v533_v27  ;;  %v537_v57 = vsel %vm535_vm3, %v536_v49, %v527_v55  ;;  %v713_v33 = vshrl.u32 %v2868_v50, %v1837_v46  ;;  %v1317_v27 = vpop.permute.xlu1 %1316 }
 0x100   : > { %v2227_v47 = vor.u32 %v716_v23, %v715_v44  ;;  %v538_v31 = vsel %vm531_vm0, %v534_v11, %v537_v57  ;;  %v353_v25 = vsel %vm232_vm10, %v352_v41, %v351_v29  ;;  %v2233_v5 = vor.u32 %v719_v45, %v718_v59 }
 0x101   : > { %v949_v54 = vadd.s32 536870912, %v948_v18  ;;  %v539_v63 = vsel %vm528_vm15, nan, %v538_v31  ;;  %v2240_v12 = vsel %vm2174_vm4, %v1747_v38, %v353_v25  ;;  %v703_v2 = vor.u32 8388608, %v702_v48 }
 0x102   : > { %vm727_vm5 = vcmp.lt.s32.totalorder %v1987_v6, 1  ;;  %v1352_v17 = vadd.f32 %v1345_v60, %v539_v63  ;;  %v358_v40 = vmul.f32 %v2240_v12, %v2240_v12  ;;  %vm729_vm6 = vcmp.lt.s32.totalorder %v1987_v6, 3 }
 0x103   : > { %v2245_v34 = vshrl.u32 %v949_v54, 30  ;;  %v712_v53 = vshll.u32 %v2869_v14, %v1819_v37  ;;  %vm728_vm9 = vcmp.lt.s32.totalorder %v1987_v6, 2  ;;  %v739_v9 = vsel %vm727_vm5, %v2227_v47, %v2233_v5 }
 0x104   : > { %v741_v20 = vsel %vm729_vm6, %v2019_v43, %v2065_v36  ;;  %v2261_v0 = vshrl.u32 %v2872_v39, %v1899_v58  ;;  %1359 = vst [vmem:[%s2263_s7 + $0x8] sm:$0xff] %v1352_v17  ;;  %v359_v37 = vmul.f32 -0.001358992, %v358_v40  ;;  %v366_v35 = vmul.f32 -0.00019511016, %v358_v40 }
 0x105   : > { %v951_v4 = vshll.u32 %v2245_v34, 30  ;;  %v2267_v7 = vand.u32 3, %v374_v21  ;;  %v714_v8 = vor.u32 %v713_v33, %v712_v53  ;;  %v742_v55 = vsel %vm728_vm9, %v739_v9, %v741_v20 }
 0x106   : > { %v2271_v49 = vshll.u32 %v703_v2, 8  ;;  %v360_v43 = vadd.f32 0.041655596, %v359_v37  ;;  %v367_v36 = vadd.f32 0.008332121, %v366_v35  ;;  %v746_v3 = vand.u32 65535, %v742_v55 }
 0x107   : > { %v2273_v39 = vsub.s32 %v948_v18, %v951_v4  ;;  %v711_v60 = vshrl.u32 %v2869_v14, %v1837_v46  ;;  %v747_v23 = vshrl.u32 %v742_v55, 16  ;;  %vm852_vm10 = vcmp.lt.s32.totalorder %v1715_v13, 0 }
 0x108   : > { %v2278_v29 = vand.u32 65535, %v2271_v49  ;;  %v2281_v21 = vshrl.u32 %v2271_v49, 16  ;;  %v361_v32 = vmul.f32 %v360_v43, %v358_v40  ;;  %v368_v48 = vmul.f32 %v367_v36, %v358_v40 }
 0x109   : > { %vm953_vm11 = vcmp.lt.s32.totalorder %v2273_v39, 0  ;;  %v954_v44 = vsub.s32 0, %v2273_v39  ;;  %v1344_v41 = vmul.f32 %v2201_v61, %v1317_v27  ;;  %v944_v46 = vadd.s32 %v2188_v1, %v2186_v62 }
 0x10a   : > { %v749_v18 = vmul.u32 %v747_v23, %v2278_v29  ;;  %v2291_v59 = vmul.u32 %v746_v3, %v2281_v21  ;;  %v362_v45 = vadd.f32 -0.4999988, %v361_v32  ;;  %v369_v11 = vadd.f32 -0.16666654, %v368_v48 }
 0x10b   : > { %v955_v57 = vsel %vm953_vm11, %v954_v44, %v2273_v39  ;;  %v2296_v33 = vsel %vm727_vm5, %v711_v60, %v714_v8  ;;  %vm377_vm4 = vcmp.eq.s32.totalorder %v2267_v7, 0  ;;  %vm380_vm12 = vcmp.eq.s32.totalorder %v2267_v7, 2 }
 0x10c   : > { %v956_v31 = vclz %v955_v57  ;;  %v735_v62 = vsel %vm727_vm5, %v714_v8, %v2227_v47  ;;  %v748_v1 = vmul.u32 %v746_v3, %v2278_v29  ;;  %v752_v25 = vshll.u32 %v749_v18, 16 }
 0x10d   : > { %v363_v54 = vmul.f32 %v362_v45, %v358_v40  ;;  %v370_v63 = vmul.f32 %v369_v11, %v358_v40  ;;  %vm376_vm13 = vcmp.lt.s32.totalorder %v2267_v7, 2  ;;  %v974_v2 = vsub.s32 4, %v2245_v34 }
 0x10e   : > { %v737_v17 = vsel %vm729_vm6, %v2233_v5, %v2036_v51  ;;  %vm373_vm14 = vweird.f32 %v1747_v38  ;;  %v2883_v53 = vand.u32 2147483647, %v1715_v13  ;;  %v1468_v20 = vadd.s32 4294967294, %v956_v31 }
 0x10f   : > { %v754_v40 = vshll.u32 %v2291_v59, 16  ;;  %vm756_vm0 = vc.u32 %v748_v1, %v752_v25  ;;  %v758_v37 = vadd.s32 %v752_v25, %v748_v1  ;;  %v364_v35 = vadd.f32 1.0, %v363_v54 }
 0x110   : > { %vm2313_vm15 = vcmp.le.f32.partialorder %v2883_v53, 0.7853982  ;;  %v371_v4 = vadd.f32 1.0, %v370_v63  ;;  %v732_v8 = vsel %vm730_vm8, %v2233_v5, 2102212464  ;;  %v751_v51 = vmul.u32 %v747_v23, %v2281_v21 }
 0x111   : > { %vm1469_vm1 = vcmp.lt.s32.totalorder %v1468_v20, 0  ;;  %v738_v55 = vsel %vm728_vm9, %v735_v62, %v737_v17  ;;  %v757_v43 = vsel %vm756_vm0, 1, %v2867_v22  ;;  %vm760_vm2 = vc.u32 %v758_v37, %v754_v40 }
 0x112   : > { %v372_v36 = vmul.f32 %v371_v4, %v2240_v12  ;;  %v381_v3 = vxor.u32 2147483648, %v364_v35  ;;  %v959_v60 = vsel %vm1469_vm1, 0, %v1468_v20  ;;  %v759_v27 = vadd.s32 %v757_v43, %v751_v51 }
 0x113   : > { %v960_v32 = vsub.s32 32, %v959_v60  ;;  %v964_v48 = vsub.s32 4294967266, %v959_v60  ;;  %v975_v5 = vsel %vm852_vm10, %v974_v2, %v2245_v34  ;;  %v761_v23 = vsel %vm760_vm2, 1, %v2867_v22 }
 0x114   : > { %v378_v44 = vxor.u32 2147483648, %v372_v36  ;;  %v753_v45 = vshrl.u32 %v749_v18, 16  ;;  %v763_v11 = vadd.s32 %v761_v23, %v759_v27  ;;  %v768_v57 = vand.u32 65535, %v738_v55 }
 0x115   : > { %v961_v31 = vshll.u32 %v2273_v39, %v959_v60  ;;  %v962_v62 = vshrl.u32 %v944_v46, %v960_v32  ;;  %v965_v1 = vadd.s32 127, %v964_v48  ;;  %v769_v12 = vshrl.u32 %v738_v55, 16 }
 0x116   : > { %v379_v25 = vsel %vm377_vm4, %v364_v35, %v378_v44  ;;  %v382_v54 = vsel %vm380_vm12, %v381_v3, %v372_v36  ;;  %v764_v63 = vadd.s32 %v763_v11, %v753_v45  ;;  %v772_v34 = vmul.u32 %v768_v57, %v2281_v21 }
 0x117   : > { %v383_v2 = vsel %vm376_vm13, %v379_v25, %v382_v54  ;;  %v963_v18 = vor.u32 %v962_v62, %v961_v31  ;;  %v966_v17 = vshll.u32 %v965_v1, 23  ;;  %v771_v39 = vmul.u32 %v769_v12, %v2278_v29 }
 0x118   : > { %v384_v46 = vsel %vm373_vm14, nan, %v383_v2  ;;  %v977_v53 = vsel %vm2313_vm15, 0, %v975_v5  ;;  %v733_v20 = vsel %vm729_vm6, %v2227_v47, %v732_v8  ;;  %v755_v40 = vshrl.u32 %v2291_v59, 16 }
 0x119   : > { %v1351_v37 = vadd.f32 %v1344_v41, %v384_v46  ;;  %v967_v7 = vor.u32 4788187, %v966_v17  ;;  %v770_v35 = vmul.u32 %v768_v57, %v2278_v29  ;;  %v774_v4 = vshll.u32 %v771_v39, 16  ;;  %v2886_v46 = vld [vmem:[#allocation12_spill] sm:$0xff] }
 0x11a   : > { %v970_v51 = vcvt.s32.f32 %v963_v18  ;;  %v765_v55 = vadd.s32 %v764_v63, %v755_v40  ;;  %v773_v43 = vmul.u32 %v769_v12, %v2281_v21  ;;  %v776_v38 = vshll.u32 %v772_v34, 16 }
 0x11b   : > { %1358 = vst [vmem:[%s2263_s7] sm:$0xff] %v1351_v37  ;;  %v968_v36 = vand.u32 2147483647, %v967_v7  ;;  %vm778_vm8 = vc.u32 %v770_v35, %v774_v4  ;;  %v780_v3 = vadd.s32 %v774_v4, %v770_v35  ;;  %v1005_v60 = vand.u32 2147483647, %v1719_v16 }
 0x11c   : > { %v775_v27 = vshrl.u32 %v771_v39, 16  ;;  %v779_v47 = vsel %vm778_vm8, 1, %v2867_v22  ;;  %v1022_v41 = vshll.u32 %v2869_v14, %v1727_v26  ;;  %v1023_v29 = vshrl.u32 %v2868_v50, %v1731_v30 }
 0x11d   : > { %v971_v59 = vmul.f32 %v970_v51, %v968_v36  ;;  %v781_v8 = vadd.s32 %v779_v47, %v773_v43  ;;  %vm782_vm3 = vc.u32 %v780_v3, %v776_v38  ;;  %v784_v21 = vadd.s32 %v780_v3, %v776_v38 }
 0x11e   : > { %v777_v32 = vshrl.u32 %v772_v34, 16  ;;  %v783_v48 = vsel %vm782_vm3, 1, %v2867_v22  ;;  %v1012_v5 = vand.u32 8388607, %v1005_v60  ;;  %v2359_v23 = vor.u32 %v1023_v29, %v1022_v41 }
 0x11f   : > { %v972_v44 = vxor.u32 2147483648, %v971_v59  ;;  %v785_v45 = vadd.s32 %v783_v48, %v781_v8  ;;  %v2361_v11 = vadd.s32 %v784_v21, %v765_v55  ;;  %vm790_vm5 = vc.u32 %v765_v55, %v784_v21  ;;  %v2888_v8 = vld [vmem:[#allocation6_spill] sm:$0xff]  ;;  %v2889_v55 = vld [vmem:[#allocation17_spill] sm:$0xff] }
 0x120   : > { %v1013_v57 = vor.u32 8388608, %v1012_v5  ;;  %v1025_v31 = vshll.u32 %v2868_v50, %v1727_v26  ;;  %v1026_v62 = vshrl.u32 %v2870_v56, %v1731_v30  ;;  %v1028_v1 = vshll.u32 %v2870_v56, %v1727_v26  ;;  %v2890_v21 = vld [vmem:[#allocation18_spill] sm:$0xff] }
 0x121   : > { %vm1195_vm6 = vcmp.lt.s32.totalorder %v2125_v28, 4  ;;  %v973_v12 = vsel %vm852_vm10, %v972_v44, %v971_v59  ;;  %v786_v25 = vadd.s32 %v785_v45, %v775_v27  ;;  %v1029_v54 = vshrl.u32 %v2871_v24, %v1731_v30 }
 0x122   : > { %vm1037_vm11 = vcmp.lt.s32.totalorder %v1829_v42, 1  ;;  %v2378_v63 = vsel %vm2313_vm15, %v1715_v13, %v973_v12  ;;  %v994_v34 = vadd.s32 3, %v977_v53  ;;  %v2380_v2 = vor.u32 %v1026_v62, %v1025_v31 }
 0x123   : > { %vm1039_vm4 = vcmp.lt.s32.totalorder %v1829_v42, 3  ;;  %v978_v26 = vmul.f32 %v2378_v63, %v2378_v63  ;;  %v734_v18 = vsel %vm728_vm9, %v2296_v33, %v733_v20  ;;  %v787_v17 = vadd.s32 %v786_v25, %v777_v32  ;;  %v2887_v33 = vld [vmem:[#allocation16_spill] sm:$0xff] }
 0x124   : > { %v1030_v39 = vor.u32 %v1029_v54, %v1028_v1  ;;  %vm1038_vm10 = vcmp.lt.s32.totalorder %v1829_v42, 2  ;;  %v1045_v9 = vsel %vm1037_vm11, %v2359_v23, %v2380_v2  ;;  %v1051_v53 = vsel %vm1039_vm4, %v2886_v46, %v2006_v15 }
 0x125   : > { %v2397_v40 = vshll.u32 %v1013_v57, 8  ;;  %v979_v37 = vmul.f32 -0.001358992, %v978_v26  ;;  %v986_v7 = vmul.f32 -0.00019511016, %v978_v26  ;;  %v791_v6 = vadd.s32 1, %v787_v17 }
 0x126   : > { %v1047_v20 = vsel %vm1039_vm4, %v1030_v39, %v2887_v33  ;;  %v2404_v35 = vor.u32 %v2261_v0, %v2131_v10  ;;  %v2406_v4 = vand.u32 3, %v994_v34  ;;  %v788_v51 = vmul.u32 %v2271_v49, %v734_v18 }
 0x127   : > { %v1049_v15 = vsel %vm1037_vm11, %v2380_v2, %v1030_v39  ;;  %v980_v43 = vadd.f32 0.041655596, %v979_v37  ;;  %v987_v38 = vadd.f32 0.008332121, %v986_v7  ;;  %v792_v36 = vsel %vm790_vm5, %v791_v6, %v787_v17  ;;  %v1333_v17 = vpop.permute.xlu2 %1332 }
 0x128   : > { %v1054_v3 = vand.u32 65535, %v2397_v40  ;;  %v793_v27 = vadd.s32 %v792_v36, %v788_v51  ;;  %v2416_v47 = vsel %vm1038_vm10, %v1045_v9, %v1047_v20  ;;  %v1052_v10 = vsel %vm1038_vm10, %v1049_v15, %v1051_v53 }
 0x129   : > { %v1055_v0 = vshrl.u32 %v2397_v40, 16  ;;  %v981_v49 = vmul.f32 %v980_v43, %v978_v26  ;;  %v988_v41 = vmul.f32 %v987_v38, %v978_v26  ;;  %v1056_v29 = vand.u32 65535, %v1052_v10 }
 0x12a   : > { %v1057_v59 = vshrl.u32 %v1052_v10, 16  ;;  %v2422_v32 = vshrl.u32 %v2888_v8, 5  ;;  %v2426_v48 = vor.u32 %v2890_v21, %v2889_v55  ;;  %v2431_v5 = vsel %vm1195_vm6, %v2404_v35, 920167782 }
 0x12b   : > { %v794_v44 = vadd.s32 536870912, %v793_v27  ;;  %v982_v45 = vadd.f32 -0.4999988, %v981_v49  ;;  %v989_v57 = vadd.f32 -0.16666654, %v988_v41  ;;  %v1058_v31 = vmul.u32 %v1056_v29, %v1054_v3 }
 0x12c   : > { %v1059_v62 = vmul.u32 %v1057_v59, %v1054_v3  ;;  %vm997_vm9 = vcmp.eq.s32.totalorder %v2406_v4, 0  ;;  %vm1000_vm12 = vcmp.eq.s32.totalorder %v2406_v4, 2  ;;  %v1021_v12 = vshrl.u32 %v2869_v14, %v1731_v30 }
 0x12d   : > { %v2435_v1 = vshrl.u32 %v794_v44, 30  ;;  %v1060_v25 = vmul.u32 %v1056_v29, %v1055_v0  ;;  %v1079_v54 = vshrl.u32 %v2416_v47, 16  ;;  %v983_v34 = vmul.f32 %v982_v45, %v978_v26 }
 0x12e   : > { %v990_v18 = vmul.f32 %v989_v57, %v978_v26  ;;  %vm996_vm13 = vcmp.lt.s32.totalorder %v2406_v4, 2  ;;  %v1061_v9 = vmul.u32 %v1057_v59, %v1055_v0  ;;  %v1062_v46 = vshll.u32 %v1059_v62, 16 }
 0x12f   : > { %v796_v53 = vshll.u32 %v2435_v1, 30  ;;  %v1042_v37 = vsel %vm1040_vm7, %v1030_v39, 2102212464  ;;  %v1064_v7 = vshll.u32 %v1060_v25, 16  ;;  %v1078_v6 = vand.u32 65535, %v2416_v47 }
 0x130   : > { %v984_v33 = vadd.f32 1.0, %v983_v34  ;;  %v991_v30 = vadd.f32 1.0, %v990_v18  ;;  %vm1066_vm14 = vc.u32 %v1058_v31, %v1062_v46  ;;  %v1068_v20 = vadd.s32 %v1062_v46, %v1058_v31  ;;  %v2891_v46 = vld [vmem:[#allocation11_spill] sm:$0xff] }
 0x131   : > { %v1348_v51 = vmul.f32 %v2201_v61, %v1333_v17  ;;  %v2446_v26 = vsub.s32 %v793_v27, %v796_v53  ;;  %v1041_v15 = vsel %vm1037_vm11, %v1021_v12, %v2359_v23  ;;  %v1067_v43 = vsel %vm1066_vm14, 1, %v2867_v22 }
 0x132   : > { %v992_v38 = vmul.f32 %v991_v30, %v2378_v63  ;;  %v1001_v39 = vxor.u32 2147483648, %v984_v33  ;;  %v1069_v36 = vadd.s32 %v1067_v43, %v1061_v9  ;;  %v1081_v10 = vmul.u32 %v1079_v54, %v1054_v3 }
 0x133   : > { %vm798_vm7 = vcmp.lt.s32.totalorder %v2446_v26, 0  ;;  %v799_v47 = vsub.s32 0, %v2446_v26  ;;  %v1043_v27 = vsel %vm1039_vm4, %v2380_v2, %v1042_v37  ;;  %vm1070_vm15 = vc.u32 %v1068_v20, %v1064_v7 }
 0x134   : > { %v998_v49 = vxor.u32 2147483648, %v992_v38  ;;  %v1063_v41 = vshrl.u32 %v1059_v62, 16  ;;  %v1071_v23 = vsel %vm1070_vm15, 1, %v2867_v22  ;;  %v1082_v29 = vmul.u32 %v1078_v6, %v1055_v0 }
 0x135   : > { %v800_v59 = vsel %vm798_vm7, %v799_v47, %v2446_v26  ;;  %v1065_v63 = vshrl.u32 %v1060_v25, 16  ;;  %v1073_v8 = vadd.s32 %v1071_v23, %v1069_v36  ;;  %v1080_v55 = vmul.u32 %v1078_v6, %v1054_v3  ;;  %v2892_v36 = vld [vmem:[#allocation15_spill] sm:$0xff] }
 0x136   : > { %v999_v21 = vsel %vm997_vm9, %v984_v33, %v998_v49  ;;  %v1002_v44 = vsel %vm1000_vm12, %v1001_v39, %v992_v38  ;;  %v801_v45 = vclz %v800_v59  ;;  %v1084_v57 = vshll.u32 %v1081_v10, 16  ;;  %v2897_v59 = vld [vmem:[#allocation13_spill] sm:$0xff] }
 0x137   : > { %vm993_vm0 = vweird.f32 %v1715_v13  ;;  %v1003_v2 = vsel %vm996_vm13, %v999_v21, %v1002_v44  ;;  %v2469_v31 = vsel %vm1038_vm10, %v1041_v15, %v1043_v27  ;;  %v1083_v62 = vmul.u32 %v1079_v54, %v1055_v0 }
 0x138   : > { %v1004_v3 = vsel %vm993_vm0, nan, %v1003_v2  ;;  %v1465_v12 = vadd.s32 4294967294, %v801_v45  ;;  %v1074_v25 = vadd.s32 %v1073_v8, %v1063_v41  ;;  %v1086_v34 = vshll.u32 %v1082_v29, 16 }
 0x139   : > { %vm697_vm1 = vcmp.lt.s32.totalorder %v1757_v52, 0  ;;  %v1355_v18 = vadd.f32 %v1348_v51, %v1004_v3  ;;  %v1085_v17 = vshrl.u32 %v1081_v10, 16  ;;  %vm1088_vm2 = vc.u32 %v1080_v55, %v1084_v57  ;;  %v2893_v10 = vld [vmem:[#allocation14_spill] sm:$0xff] }
 0x13a   : > { %v1090_v9 = vadd.s32 %v1084_v57, %v1080_v55  ;;  %vm1466_vm8 = vcmp.lt.s32.totalorder %v1465_v12, 0  ;;  %v1075_v13 = vadd.s32 %v1074_v25, %v1065_v63  ;;  %v1089_v4 = vsel %vm1088_vm2, 1, %v2867_v22 }
 0x13b   : > { %v1160_v42 = vand.u32 2147483647, %v2891_v46  ;;  %vm575_vm3 = vcmp.lt.s32.totalorder %v2422_v32, 4  ;;  %1362 = vst [vmem:[%s2263_s7 + $0x20] sm:$0xff] %v1355_v18  ;;  %v804_v0 = vsel %vm1466_vm8, 0, %v1465_v12  ;;  %v1091_v54 = vadd.s32 %v1089_v4, %v1083_v62 }
 0x13c   : > { %vm1092_vm5 = vc.u32 %v1090_v9, %v1086_v34  ;;  %v1094_v53 = vadd.s32 %v1090_v9, %v1086_v34  ;;  %v805_v37 = vsub.s32 32, %v804_v0  ;;  %v809_v7 = vsub.s32 4294967266, %v804_v0 }
 0x13d   : > { %v819_v6 = vsub.s32 4, %v2435_v1  ;;  %v1093_v33 = vsel %vm1092_vm5, 1, %v2867_v22  ;;  %v1087_v30 = vshrl.u32 %v1082_v29, 16  ;;  %v806_v15 = vshll.u32 %v2446_v26, %v804_v0 }
 0x13e   : > { %v1095_v20 = vadd.s32 %v1093_v33, %v1091_v54  ;;  %v2478_v51 = vadd.s32 %v1094_v53, %v1075_v13  ;;  %vm1100_vm11 = vc.u32 %v1075_v13, %v1094_v53  ;;  %v807_v43 = vshrl.u32 %v2361_v11, %v805_v37 }
 0x13f   : > { %v810_v38 = vadd.s32 127, %v809_v7  ;;  %v1167_v39 = vand.u32 8388607, %v1160_v42  ;;  %v2894_v47 = vor.u32 %v2892_v36, %v2893_v10  ;;  %vm2491_vm4 = vcmp.le.f32.partialorder %v695_v19, 0.7853982  ;;  %v2898_v36 = vld [vmem:[#allocation10_spill] sm:$0xff] }
 0x140   : > { %v1096_v41 = vadd.s32 %v1095_v20, %v1085_v17  ;;  %v1178_v11 = vshrl.u32 %v2868_v50, %v1899_v58  ;;  %v808_v26 = vor.u32 %v807_v43, %v806_v15  ;;  %v1098_v29 = vmul.u32 %v2397_v40, %v2469_v31  ;;  %v2899_v10 = vld [vmem:[#allocation9_spill] sm:$0xff] }
 0x141   : > { %v1205_v27 = vsel %vm1195_vm6, %v2894_v47, 1326507024  ;;  %v811_v23 = vshll.u32 %v810_v38, 23  ;;  %v1177_v63 = vshll.u32 %v2869_v14, %v2897_v59  ;;  %v1168_v55 = vor.u32 8388608, %v1167_v39 }
 0x142   : > { %v1097_v8 = vadd.s32 %v1096_v41, %v1087_v30  ;;  %v1180_v19 = vshll.u32 %v2868_v50, %v2897_v59  ;;  %v1181_v21 = vshrl.u32 %v2870_v56, %v1899_v58  ;;  %v820_v45 = vsel %vm697_vm1, %v819_v6, %v2435_v1 }
 0x143   : > { %v812_v44 = vor.u32 4788187, %v811_v23  ;;  %v1183_v57 = vshll.u32 %v2870_v56, %v2897_v59  ;;  %v1184_v40 = vshrl.u32 %v2871_v24, %v1899_v58  ;;  %v1179_v31 = vor.u32 %v1178_v11, %v1177_v63 }
 0x144   : > { %v1101_v2 = vadd.s32 1, %v1097_v8  ;;  %v1182_v62 = vor.u32 %v1181_v21, %v1180_v19  ;;  %vm1194_vm10 = vcmp.lt.s32.totalorder %v2125_v28, 3  ;;  %v815_v12 = vcvt.s32.f32 %v808_v26 }
 0x145   : > { %v813_v3 = vand.u32 2147483647, %v812_v44  ;;  %v1185_v25 = vor.u32 %v1184_v40, %v1183_v57  ;;  %v1206_v34 = vsel %vm1194_vm10, %v2404_v35, %v1205_v27  ;;  %v822_v1 = vsel %vm2491_vm4, 0, %v820_v45 }
 0x146   : > { %v1102_v18 = vsel %vm1100_vm11, %v1101_v2, %v1097_v8  ;;  %v2519_v17 = vshll.u32 %v1168_v55, 8  ;;  %v2524_v9 = vsel %vm575_vm3, %v2426_v48, 920167782  ;;  %vm1192_vm9 = vcmp.lt.s32.totalorder %v2125_v28, 1 }
 0x147   : > { %v816_v4 = vmul.f32 %v815_v12, %v813_v3  ;;  %v1103_v0 = vadd.s32 %v1102_v18, %v1098_v29  ;;  %vm1193_vm12 = vcmp.lt.s32.totalorder %v2125_v28, 2  ;;  %v1200_v35 = vsel %vm1192_vm9, %v1179_v31, %v1182_v62 }
 0x148   : > { %v1202_v13 = vsel %vm1194_vm10, %v1185_v25, %v2431_v5  ;;  %v1204_v54 = vsel %vm1192_vm9, %v1182_v62, %v1185_v25  ;;  %v839_v37 = vadd.s32 3, %v822_v1  ;;  %v2538_v33 = vand.u32 65535, %v2519_v17 }
 0x149   : > { %v817_v53 = vxor.u32 2147483648, %v816_v4  ;;  %v1104_v7 = vadd.s32 536870912, %v1103_v0  ;;  %v1207_v6 = vsel %vm1193_vm12, %v1204_v54, %v1206_v34  ;;  %v2541_v30 = vshrl.u32 %v2519_v17, 16 }
 0x14a   : > { %v1211_v20 = vand.u32 65535, %v1207_v6  ;;  %v1212_v15 = vshrl.u32 %v1207_v6, 16  ;;  %v1176_v38 = vshrl.u32 %v2869_v14, %v1899_v58  ;;  %v1203_v39 = vsel %vm1193_vm12, %v1200_v35, %v1202_v13 }
 0x14b   : > { %v818_v5 = vsel %vm697_vm1, %v817_v53, %v816_v4  ;;  %v2545_v43 = vshrl.u32 %v1104_v7, 30  ;;  %v2900_v47 = vor.u32 %v2898_v36, %v2899_v10  ;;  %v2567_v23 = vand.u32 3, %v839_v37 }
 0x14c   : > { %v2561_v41 = vsel %vm2491_vm4, %v1757_v52, %v818_v5  ;;  %v1214_v11 = vmul.u32 %v1212_v15, %v2538_v33  ;;  %v1215_v26 = vmul.u32 %v1211_v20, %v2541_v30  ;;  %v1196_v59 = vsel %vm1192_vm9, %v1176_v38, %v1179_v31 }
 0x14d   : > { %v2556_v27 = vsel %vm575_vm3, %v2900_v47, 1326507024  ;;  %v823_v58 = vmul.f32 %v2561_v41, %v2561_v41  ;;  %v1106_v29 = vshll.u32 %v2545_v43, 30  ;;  %v1197_v63 = vsel %vm1195_vm6, %v1185_v25, 2102212464 }
 0x14e   : > { %v1213_v49 = vmul.u32 %v1211_v20, %v2538_v33  ;;  %v1217_v8 = vshll.u32 %v1214_v11, 16  ;;  %v1234_v55 = vshrl.u32 %v1203_v39, 16  ;;  %v1233_v45 = vand.u32 65535, %v1203_v39 }
 0x14f   : > { %v824_v19 = vmul.f32 -0.001358992, %v823_v58  ;;  %v831_v21 = vmul.f32 -0.00019511016, %v823_v58  ;;  %v2575_v44 = vsub.s32 %v1103_v0, %v1106_v29  ;;  %v1216_v57 = vmul.u32 %v1212_v15, %v2541_v30  ;;  %v1329_v0 = vpop.permute.xlu1 %1328 }
 0x150   : > { %v1219_v40 = vshll.u32 %v1215_v26, 16  ;;  %vm1221_vm13 = vc.u32 %v1213_v49, %v1217_v8  ;;  %v1223_v2 = vadd.s32 %v1217_v8, %v1213_v49  ;;  %v1198_v25 = vsel %vm1194_vm10, %v1182_v62, %v1197_v63 }
 0x151   : > { %v825_v3 = vadd.f32 0.041655596, %v824_v19  ;;  %v832_v12 = vadd.f32 0.008332121, %v831_v21  ;;  %vm1108_vm14 = vcmp.lt.s32.totalorder %v2575_v44, 0  ;;  %v1109_v31 = vsub.s32 0, %v2575_v44 }
 0x152   : > { %v1222_v34 = vsel %vm1221_vm13, 1, %v2867_v22  ;;  %vm1225_vm6 = vc.u32 %v1223_v2, %v1219_v40  ;;  %v2584_v1 = vmul.u32 %v1234_v55, %v2538_v33  ;;  %vm845_vm7 = vcmp.eq.s32.totalorder %v2567_v23, 2 }
 0x153   : > { %v826_v18 = vmul.f32 %v825_v3, %v823_v58  ;;  %v833_v4 = vmul.f32 %v832_v12, %v823_v58  ;;  %v1110_v35 = vsel %vm1108_vm14, %v1109_v31, %v2575_v44  ;;  %v1224_v13 = vadd.s32 %v1222_v34, %v1216_v57  ;;  %v2903_v31 = vld [vmem:[#allocation5_spill] sm:$0xff] }
 0x154   : > { %v1347_v54 = vmul.f32 %v2201_v61, %v1329_v0  ;;  %v1111_v53 = vclz %v1110_v35  ;;  %v1226_v37 = vsel %vm1225_vm6, 1, %v2867_v22  ;;  %v2591_v62 = vmul.u32 %v1233_v45, %v2541_v30 }
 0x155   : > { %v827_v7 = vadd.f32 -0.4999988, %v826_v18  ;;  %v834_v6 = vadd.f32 -0.16666654, %v833_v4  ;;  %v1218_v20 = vshrl.u32 %v1214_v11, 16  ;;  %v1228_v15 = vadd.s32 %v1226_v37, %v1224_v13 }
 0x156   : > { %vm842_vm15 = vcmp.eq.s32.totalorder %v2567_v23, 0  ;;  %v1471_v5 = vadd.s32 4294967294, %v1111_v53  ;;  %v1129_v38 = vsub.s32 4, %v2545_v43  ;;  %v2597_v39 = vsel %vm1193_vm12, %v1196_v59, %v1198_v25 }
 0x157   : > { %v1220_v36 = vshrl.u32 %v1215_v26, 16  ;;  %vm1007_vm0 = vcmp.lt.s32.totalorder %v1719_v16, 0  ;;  %v828_v10 = vmul.f32 %v827_v7, %v823_v58  ;;  %v835_v47 = vmul.f32 %v834_v6, %v823_v58 }
 0x158   : > { %vm841_vm1 = vcmp.lt.s32.totalorder %v2567_v23, 2  ;;  %v1229_v29 = vadd.s32 %v1228_v15, %v1218_v20  ;;  %v1239_v11 = vshll.u32 %v2584_v1, 16  ;;  %vm838_vm2 = vweird.f32 %v1757_v52  ;;  %v2904_v23 = vld [vmem:[#allocation7_spill] sm:$0xff] }
 0x159   : > { %vm1472_vm8 = vcmp.lt.s32.totalorder %v1471_v5, 0  ;;  %v1235_v63 = vmul.u32 %v1233_v45, %v2538_v33  ;;  %v1238_v49 = vmul.u32 %v1234_v55, %v2541_v30  ;;  %v1241_v28 = vshll.u32 %v2591_v62, 16 }
 0x15a   : > { %v829_v59 = vadd.f32 1.0, %v828_v10  ;;  %v836_v26 = vadd.f32 1.0, %v835_v47  ;;  %v1114_v8 = vsel %vm1472_vm8, 0, %v1471_v5  ;;  %v1230_v19 = vadd.s32 %v1229_v29, %v1220_v36  ;;  %v2905_v29 = vld [vmem:[#allocation8_spill] sm:$0xff] }
 0x15b   : > { %v1115_v21 = vsub.s32 32, %v1114_v8  ;;  %v1116_v58 = vshll.u32 %v2575_v44, %v1114_v8  ;;  %v1119_v57 = vsub.s32 4294967266, %v1114_v8  ;;  %vm1243_vm5 = vc.u32 %v1235_v63, %v1239_v11 }
 0x15c   : > { %v837_v40 = vmul.f32 %v836_v26, %v2561_v41  ;;  %v846_v2 = vxor.u32 2147483648, %v829_v59  ;;  %v1244_v3 = vsel %vm1243_vm5, 1, %v2867_v22  ;;  %v1245_v12 = vadd.s32 %v1239_v11, %v1235_v63 }
 0x15d   : > { %vm2611_vm11 = vcmp.le.f32.partialorder %v1005_v60, 0.7853982  ;;  %v1117_v30 = vshrl.u32 %v2478_v51, %v1115_v21  ;;  %v1120_v55 = vadd.s32 127, %v1119_v57  ;;  %v1246_v45 = vadd.s32 %v1244_v3, %v1238_v49 }
 0x15e   : > { %v540_v44 = vand.u32 2147483647, %v2903_v31  ;;  %v843_v25 = vxor.u32 2147483648, %v837_v40  ;;  %v847_v41 = vsel %vm845_vm7, %v846_v2, %v837_v40  ;;  %vm1247_vm4 = vc.u32 %v1245_v12, %v1241_v28 }
 0x15f   : > { %v1249_v34 = vadd.s32 %v1245_v12, %v1241_v28  ;;  %v1118_v18 = vor.u32 %v1117_v30, %v1116_v58  ;;  %v1121_v4 = vshll.u32 %v1120_v55, 23  ;;  %v1240_v0 = vshrl.u32 %v2584_v1, 16 }
 0x160   : > { %v1248_v60 = vsel %vm1247_vm4, 1, %v2867_v22  ;;  %v844_v35 = vsel %vm842_vm15, %v829_v59, %v843_v25  ;;  %v1130_v7 = vsel %vm1007_vm0, %v1129_v38, %v2545_v43  ;;  %v1242_v1 = vshrl.u32 %v2591_v62, 16 }
 0x161   : > { %v1250_v51 = vadd.s32 %v1248_v60, %v1246_v45  ;;  %v2623_v13 = vadd.s32 %v1249_v34, %v1230_v19  ;;  %vm1255_vm10 = vc.u32 %v1230_v19, %v1249_v34  ;;  %v848_v53 = vsel %vm841_vm1, %v844_v35, %v847_v41 }
 0x162   : > { %v1122_v37 = vor.u32 4788187, %v1121_v4  ;;  %v849_v6 = vsel %vm838_vm2, nan, %v848_v53  ;;  %v1125_v20 = vcvt.s32.f32 %v1118_v18  ;;  %v547_v5 = vand.u32 8388607, %v540_v44 }
 0x163   : > { %v1251_v15 = vadd.s32 %v1250_v51, %v1240_v0  ;;  %v1354_v36 = vadd.f32 %v1347_v54, %v849_v6  ;;  %v557_v47 = vshll.u32 %v2869_v14, %v2904_v23  ;;  %v558_v11 = vshrl.u32 %v2868_v50, %v2905_v29 }
 0x164   : > { %v1123_v10 = vand.u32 2147483647, %v1122_v37  ;;  %v548_v43 = vor.u32 8388608, %v547_v5  ;;  %v560_v62 = vshll.u32 %v2868_v50, %v2904_v23  ;;  %v561_v52 = vshrl.u32 %v2870_v56, %v2905_v29 }
 0x165   : > { %v1252_v63 = vadd.s32 %v1251_v15, %v1242_v1  ;;  %1361 = vst [vmem:[%s2263_s7 + $0x18] sm:$0xff] %v1354_v36  ;;  %v1253_v54 = vmul.u32 %v2519_v17, %v2597_v39  ;;  %v563_v49 = vshll.u32 %v2870_v56, %v2904_v23  ;;  %v564_v28 = vshrl.u32 %v2871_v24, %v2905_v29 }
 0x166   : > { %v1126_v38 = vmul.f32 %v1125_v20, %v1123_v10  ;;  %v1132_v59 = vsel %vm2611_vm11, 0, %v1130_v7  ;;  %v2652_v8 = vor.u32 %v558_v11, %v557_v47  ;;  %v2654_v50 = vor.u32 %v561_v52, %v560_v62  ;;  %v1337_v47 = vpop.permute.xlu1 %1336 }
 0x167   : > { %v1256_v26 = vadd.s32 1, %v1252_v63  ;;  %v2656_v58 = vor.u32 %v564_v28, %v563_v49  ;;  %vm572_vm9 = vcmp.lt.s32.totalorder %v2422_v32, 1  ;;  %vm574_vm12 = vcmp.lt.s32.totalorder %v2422_v32, 3 }
 0x168   : > { %v1127_v21 = vxor.u32 2147483648, %v1126_v38  ;;  %vm573_vm13 = vcmp.lt.s32.totalorder %v2422_v32, 2  ;;  %v586_v24 = vsel %vm574_vm12, %v2426_v48, %v2556_v27  ;;  %v2666_v17 = vshll.u32 %v548_v43, 8 }
 0x169   : > { %v1257_v56 = vsel %vm1255_vm10, %v1256_v26, %v1252_v63  ;;  %v1149_v2 = vadd.s32 3, %v1132_v59  ;;  %v580_v19 = vsel %vm572_vm9, %v2652_v8, %v2654_v50  ;;  %v584_v48 = vsel %vm572_vm9, %v2654_v50, %v2656_v58 }
 0x16a   : > { %v1128_v39 = vsel %vm1007_vm0, %v1127_v21, %v1126_v38  ;;  %v1258_v57 = vadd.s32 %v1257_v56, %v1253_v54  ;;  %v582_v12 = vsel %vm574_vm12, %v2656_v58, %v2524_v9  ;;  %v587_v33 = vsel %vm573_vm13, %v584_v48, %v586_v24 }
 0x16b   : > { %v1131_v40 = vsel %vm2611_vm11, %v1719_v16, %v1128_v39  ;;  %v589_v30 = vand.u32 65535, %v2666_v17  ;;  %v590_v55 = vshrl.u32 %v2666_v17, 16  ;;  %v591_v45 = vand.u32 65535, %v587_v33 }
 0x16c   : > { %v1133_v27 = vmul.f32 %v1131_v40, %v1131_v40  ;;  %v1259_v3 = vadd.s32 536870912, %v1258_v57  ;;  %v592_v25 = vshrl.u32 %v587_v33, 16  ;;  %v583_v9 = vsel %vm573_vm13, %v580_v19, %v582_v12 }
 0x16d   : > { %v595_v0 = vmul.u32 %v591_v45, %v590_v55  ;;  %v1150_v53 = vand.u32 3, %v1149_v2  ;;  %v593_v37 = vmul.u32 %v591_v45, %v589_v30  ;;  %v614_v36 = vshrl.u32 %v583_v9, 16 }
 0x16e   : > { %v1134_v41 = vmul.f32 -0.001358992, %v1133_v27  ;;  %v1141_v34 = vmul.f32 -0.00019511016, %v1133_v27  ;;  %v2689_v18 = vshrl.u32 %v1259_v3, 30  ;;  %v594_v4 = vmul.u32 %v592_v25, %v589_v30 }
 0x16f   : > { %v599_v15 = vshll.u32 %v595_v0, 16  ;;  %vm1152_vm7 = vcmp.eq.s32.totalorder %v1150_v53, 0  ;;  %v596_v63 = vmul.u32 %v592_v25, %v590_v55  ;;  %v613_v62 = vand.u32 65535, %v583_v9 }
 0x170   : > { %v1135_v60 = vadd.f32 0.041655596, %v1134_v41  ;;  %v1142_v35 = vadd.f32 0.008332121, %v1141_v34  ;;  %v1261_v51 = vshll.u32 %v2689_v18, 30  ;;  %v597_v7 = vshll.u32 %v594_v4, 16 }
 0x171   : > { %vm1151_vm0 = vcmp.lt.s32.totalorder %v1150_v53, 2  ;;  %vm1155_vm1 = vcmp.eq.s32.totalorder %v1150_v53, 2  ;;  %vm1148_vm2 = vweird.f32 %v1719_v16  ;;  %v1349_v49 = vmul.f32 %v2201_v61, %v1337_v47 }
 0x172   : > { %v1136_v1 = vmul.f32 %v1135_v60, %v1133_v27  ;;  %v1143_v6 = vmul.f32 %v1142_v35, %v1133_v27  ;;  %v2694_v20 = vsub.s32 %v1258_v57, %v1261_v51  ;;  %vm601_vm14 = vc.u32 %v593_v37, %v597_v7 }
 0x173   : > { %v603_v5 = vadd.s32 %v597_v7, %v593_v37  ;;  %v602_v43 = vsel %vm601_vm14, 1, %v2867_v22  ;;  %v556_v24 = vshrl.u32 %v2869_v14, %v2905_v29  ;;  %v616_v39 = vmul.u32 %v614_v36, %v589_v30 }
 0x174   : > { %v1137_v10 = vadd.f32 -0.4999988, %v1136_v1  ;;  %v1144_v23 = vadd.f32 -0.16666654, %v1143_v6  ;;  %vm1263_vm6 = vcmp.lt.s32.totalorder %v2694_v20, 0  ;;  %v1264_v11 = vsub.s32 0, %v2694_v20 }
 0x175   : > { %vm605_vm15 = vc.u32 %v603_v5, %v599_v15  ;;  %v604_v59 = vadd.s32 %v602_v43, %v596_v63  ;;  %v577_v2 = vsel %vm575_vm3, %v2656_v58, 2102212464  ;;  %v598_v19 = vshrl.u32 %v594_v4, 16 }
 0x176   : > { %v1138_v52 = vmul.f32 %v1137_v10, %v1133_v27  ;;  %v1145_v38 = vmul.f32 %v1144_v23, %v1133_v27  ;;  %v1265_v54 = vsel %vm1263_vm6, %v1264_v11, %v2694_v20  ;;  %v606_v26 = vsel %vm605_vm15, 1, %v2867_v22 }
 0x177   : > { %v1266_v28 = vclz %v1265_v54  ;;  %v617_v48 = vmul.u32 %v613_v62, %v590_v55  ;;  %v600_v61 = vshrl.u32 %v595_v0, 16  ;;  %v608_v12 = vadd.s32 %v606_v26, %v604_v59 }
 0x178   : > { %v1139_v21 = vadd.f32 1.0, %v1138_v52  ;;  %v1146_v56 = vadd.f32 1.0, %v1145_v38  ;;  %v615_v33 = vmul.u32 %v613_v62, %v589_v30  ;;  %v618_v45 = vmul.u32 %v614_v36, %v590_v55 }
 0x179   : > { %v1474_v57 = vadd.s32 4294967294, %v1266_v28  ;;  %v619_v25 = vshll.u32 %v616_v39, 16  ;;  %v609_v29 = vadd.s32 %v608_v12, %v598_v19  ;;  %v621_v58 = vshll.u32 %v617_v48, 16 }
 0x17a   : > { %v1147_v27 = vmul.f32 %v1146_v56, %v1131_v40  ;;  %v1156_v3 = vxor.u32 2147483648, %v1139_v21  ;;  %v620_v10 = vshrl.u32 %v616_v39, 16  ;;  %v576_v16 = vsel %vm572_vm9, %v556_v24, %v2652_v8 }
 0x17b   : > { %vm1475_vm8 = vcmp.lt.s32.totalorder %v1474_v57, 0  ;;  %v610_v40 = vadd.s32 %v609_v29, %v600_v61  ;;  %vm623_vm3 = vc.u32 %v615_v33, %v619_v25  ;;  %v625_v0 = vadd.s32 %v619_v25, %v615_v33 }
 0x17c   : > { %v1153_v41 = vxor.u32 2147483648, %v1147_v27  ;;  %v1157_v34 = vsel %vm1155_vm1, %v1156_v3, %v1147_v27  ;;  %v1269_v14 = vsel %vm1475_vm8, 0, %v1474_v57  ;;  %v624_v37 = vsel %vm623_vm3, 1, %v2867_v22 }
 0x17d   : > { %v1270_v60 = vsub.s32 32, %v1269_v14  ;;  %v1271_v35 = vshll.u32 %v2694_v20, %v1269_v14  ;;  %v1274_v51 = vsub.s32 4294967266, %v1269_v14  ;;  %v626_v1 = vadd.s32 %v624_v37, %v618_v45 }
 0x17e   : > { %v1154_v4 = vsel %vm1152_vm7, %v1139_v21, %v1153_v41  ;;  %vm627_vm5 = vc.u32 %v625_v0, %v621_v58  ;;  %v629_v6 = vadd.s32 %v625_v0, %v621_v58  ;;  %v578_v47 = vsel %vm574_vm12, %v2654_v50, %v577_v2  ;;  %v1341_v0 = vpop.permute.xlu2 %1340 }
 0x17f   : > { %v1158_v9 = vsel %vm1151_vm0, %v1154_v4, %v1157_v34  ;;  %v1272_v30 = vshrl.u32 %v2623_v13, %v1270_v60  ;;  %v1275_v55 = vadd.s32 127, %v1274_v51  ;;  %v628_v36 = vsel %vm627_vm5, 1, %v2867_v22 }
 0x180   : > { %v1159_v7 = vsel %vm1148_vm2, nan, %v1158_v9  ;;  %v630_v53 = vadd.s32 %v628_v36, %v626_v1  ;;  %v2717_v23 = vadd.s32 %v629_v6, %v610_v40  ;;  %vm635_vm11 = vc.u32 %v610_v40, %v629_v6  ;;  %v1542_v6 = vld [vmem:[%s2820_s1 + $0x2] ss:$0 sm:$0xff] }
 0x181   : > { %v1356_v20 = vadd.f32 %v1349_v49, %v1159_v7  ;;  %v1273_v15 = vor.u32 %v1272_v30, %v1271_v35  ;;  %v1276_v5 = vshll.u32 %v1275_v55, 23  ;;  %v622_v11 = vshrl.u32 %v617_v48, 16 }
 0x182   : > { %v631_v63 = vadd.s32 %v630_v53, %v620_v10  ;;  %v579_v22 = vsel %vm573_vm13, %v576_v16, %v578_v47  ;;  %vm1162_vm4 = vcmp.lt.s32.totalorder %v2891_v46, 0  ;;  %v1284_v8 = vsub.s32 4, %v2689_v18 }
 0x183   : > { %1363 = vst [vmem:[%s2263_s7 + $0x28] sm:$0xff] %v1356_v20  ;;  %v1277_v13 = vor.u32 4788187, %v1276_v5  ;;  %v1280_v62 = vcvt.s32.f32 %v1273_v15  ;;  %v633_v28 = vmul.u32 %v2666_v17, %v579_v22  ;;  %vm2734_vm10 = vcmp.le.f32.partialorder %v1160_v42, 0.7853982 }
 0x184   : > { %v632_v52 = vadd.s32 %v631_v63, %v622_v11  ;;  %v1285_v24 = vsel %vm1162_vm4, %v1284_v8, %v2689_v18  ;;  %vm1303_vm6 = vweird.f32 %v2891_v46  ;;  %v1350_v20 = vmul.f32 %v1542_v6, %v1341_v0 }
 0x185   : > { %v1278_v43 = vand.u32 2147483647, %v1277_v13  ;;  %v1287_v19 = vsel %vm2734_vm10, 0, %v1285_v24  ;;  %vm542_vm15 = vcmp.lt.s32.totalorder %v2903_v31, 0  ;;  %vm541_vm0 = vcmp.le.f32.partialorder %v540_v44, 0.7853982 }
 0x186   : > { %v636_v54 = vadd.s32 1, %v632_v52  ;;  %v1304_v33 = vadd.s32 3, %v1287_v19  ;;  %vm683_vm3 = vweird.f32 %v2903_v31 }
 0x187   : > { %v1281_v38 = vmul.f32 %v1280_v62, %v1278_v43 }
 0x188   : > { %v637_v59 = vsel %vm635_vm11, %v636_v54, %v632_v52  ;;  %v1305_v29 = vand.u32 3, %v1304_v33 }
 0x189   : > { %v1282_v49 = vxor.u32 2147483648, %v1281_v38  ;;  %v638_v26 = vadd.s32 %v637_v59, %v633_v28 }
 0x18a   : > { %vm1310_vm12 = vcmp.eq.s32.totalorder %v1305_v29, 2  ;;  %vm1307_vm14 = vcmp.eq.s32.totalorder %v1305_v29, 0  ;;  %vm1306_vm7 = vcmp.lt.s32.totalorder %v1305_v29, 2 }
 0x18b   : > { %v1283_v32 = vsel %vm1162_vm4, %v1282_v49, %v1281_v38  ;;  %v639_v17 = vadd.s32 536870912, %v638_v26 }
 0x18c   : > { %v1286_v21 = vsel %vm2734_vm10, %v2891_v46, %v1283_v32 }
 0x18d   : > { %v1288_v56 = vmul.f32 %v1286_v21, %v1286_v21  ;;  %v640_v2 = vshrl.u32 %v639_v17, 30 }
 0x18f   : > { %v1289_v39 = vmul.f32 -0.001358992, %v1288_v56  ;;  %v1296_v57 = vmul.f32 -0.00019511016, %v1288_v56  ;;  %v641_v27 = vshll.u32 %v640_v2, 30  ;;  %v664_v22 = vsub.s32 4, %v640_v2 }
 0x191   : > { %v1290_v42 = vadd.f32 0.041655596, %v1289_v39  ;;  %v1297_v48 = vadd.f32 0.008332121, %v1296_v57  ;;  %v642_v12 = vsub.s32 %v638_v26, %v641_v27  ;;  %v665_v54 = vsel %vm542_vm15, %v664_v22, %v640_v2  ;;  %v1325_v2 = vpop.permute.xlu0 %1324 }
 0x192   : > { %v667_v8 = vsel %vm541_vm0, 0, %v665_v54 }
 0x193   : > { %v1291_v3 = vmul.f32 %v1290_v42, %v1288_v56  ;;  %v1298_v61 = vmul.f32 %v1297_v48, %v1288_v56  ;;  %vm643_vm9 = vcmp.lt.s32.totalorder %v642_v12, 0  ;;  %v644_v41 = vsub.s32 0, %v642_v12 }
 0x195   : > { %v1292_v45 = vadd.f32 -0.4999988, %v1291_v3  ;;  %v1299_v25 = vadd.f32 -0.16666654, %v1298_v61  ;;  %v645_v18 = vsel %vm643_vm9, %v644_v41, %v642_v12  ;;  %v1346_v61 = vmul.f32 %v1542_v6, %v1325_v2 }
 0x196   : > { %v646_v60 = vclz %v645_v18 }
 0x197   : > { %v1293_v34 = vmul.f32 %v1292_v45, %v1288_v56  ;;  %v1300_v14 = vmul.f32 %v1299_v25, %v1288_v56 }
 0x198   : > { %v1462_v58 = vadd.s32 4294967294, %v646_v60 }
 0x199   : > { %v1294_v35 = vadd.f32 1.0, %v1293_v34  ;;  %v1301_v51 = vadd.f32 1.0, %v1300_v14 }
 0x19a   : > { %vm1463_vm13 = vcmp.lt.s32.totalorder %v1462_v58, 0 }
 0x19b   : > { %v1302_v4 = vmul.f32 %v1301_v51, %v1286_v21  ;;  %v1311_v40 = vxor.u32 2147483648, %v1294_v35  ;;  %v649_v55 = vsel %vm1463_vm13, 0, %v1462_v58  ;;  %v684_v21 = vadd.s32 3, %v667_v8 }
 0x19c   : > { %v650_v37 = vsub.s32 32, %v649_v55  ;;  %v654_v7 = vsub.s32 4294967266, %v649_v55  ;;  %v651_v5 = vshll.u32 %v642_v12, %v649_v55 }
 0x19d   : > { %v1308_v9 = vxor.u32 2147483648, %v1302_v4  ;;  %v1312_v30 = vsel %vm1310_vm12, %v1311_v40, %v1302_v4  ;;  %v685_v57 = vand.u32 3, %v684_v21 }
 0x19e   : > { %v652_v36 = vshrl.u32 %v2717_v23, %v650_v37  ;;  %v655_v10 = vadd.s32 127, %v654_v7 }
 0x19f   : > { %v1309_v1 = vsel %vm1307_vm14, %v1294_v35, %v1308_v9  ;;  %vm690_vm1 = vcmp.eq.s32.totalorder %v685_v57, 2  ;;  %vm687_vm2 = vcmp.eq.s32.totalorder %v685_v57, 0  ;;  %vm686_vm8 = vcmp.lt.s32.totalorder %v685_v57, 2 }
 0x1a0   : > { %v1313_v15 = vsel %vm1306_vm7, %v1309_v1, %v1312_v30  ;;  %v653_v16 = vor.u32 %v652_v36, %v651_v5  ;;  %v656_v47 = vshll.u32 %v655_v10, 23 }
 0x1a1   : > { %v1314_v53 = vsel %vm1303_vm6, nan, %v1313_v15 }
 0x1a2   : > { %v1357_v13 = vadd.f32 %v1350_v20, %v1314_v53  ;;  %v657_v11 = vor.u32 4788187, %v656_v47  ;;  %v660_v46 = vcvt.s32.f32 %v653_v16 }
 0x1a4   : > { %1364 = vst [vmem:[%s2263_s7 + $0x30] sm:$0xff] %v1357_v13  ;;  %v658_v63 = vand.u32 2147483647, %v657_v11 }
 0x1a6   : > { %v661_v43 = vmul.f32 %v660_v46, %v658_v63 }
 0x1a8   : > { %v662_v62 = vxor.u32 2147483648, %v661_v43 }
 0x1aa   : > { %v663_v52 = vsel %vm542_vm15, %v662_v62, %v661_v43 }
 0x1ab   : > { %v666_v23 = vsel %vm541_vm0, %v2903_v31, %v663_v52 }
 0x1ac   : > { %v668_v38 = vmul.f32 %v666_v23, %v666_v23 }
 0x1ae   : > { %v669_v49 = vmul.f32 -0.001358992, %v668_v38  ;;  %v676_v28 = vmul.f32 -0.00019511016, %v668_v38 }
 0x1b0   : > { %v670_v59 = vadd.f32 0.041655596, %v669_v49  ;;  %v677_v50 = vadd.f32 0.008332121, %v676_v28 }
 0x1b2   : > { %v671_v32 = vmul.f32 %v670_v59, %v668_v38  ;;  %v678_v26 = vmul.f32 %v677_v50, %v668_v38 }
 0x1b4   : > { %v672_v56 = vadd.f32 -0.4999988, %v671_v32  ;;  %v679_v17 = vadd.f32 -0.16666654, %v678_v26 }
 0x1b6   : > { %v673_v24 = vmul.f32 %v672_v56, %v668_v38  ;;  %v680_v39 = vmul.f32 %v679_v17, %v668_v38 }
 0x1b8   : > { %v674_v19 = vadd.f32 1.0, %v673_v24  ;;  %v681_v44 = vadd.f32 1.0, %v680_v39 }
 0x1ba   : > { %v682_v42 = vmul.f32 %v681_v44, %v666_v23  ;;  %v691_v48 = vxor.u32 2147483648, %v674_v19 }
 0x1bc   : > { %v688_v27 = vxor.u32 2147483648, %v682_v42  ;;  %v692_v3 = vsel %vm690_vm1, %v691_v48, %v682_v42 }
 0x1be   : > { %v689_v12 = vsel %vm687_vm2, %v674_v19, %v688_v27 }
 0x1bf   : > { %v693_v33 = vsel %vm686_vm8, %v689_v12, %v692_v3  ;;  %1372 = sbr.rel (!%p1682_p5) target bundleno = 483 (0x1e3), region = 32 }
 0x1c0   : > { %v694_v45 = vsel %vm683_vm3, nan, %v693_v33 }
 0x1c1   : > { %v1353_v25 = vadd.f32 %v1346_v61, %v694_v45 }
 0x1c3   : > { %1360 = vst [vmem:[%s2263_s7 + $0x10] sm:$0xff] %v1353_v25 }
 0x1c4   : > { %s2914_s17 = smov (!%p1375_p11, %s1374_s17), 7 }
 0x1c5   : > { %s1476_s22 = sshll.u32 %s2914_s17, 3 }
 0x1c6   : > { %s1378_s23 = ssub.s32 56, %s1476_s22 }
 0x1c7   : > { %s1379_s24 = sshll.u32 %s1378_s23, 4 }
 0x1c8   : > { %1380 = vsyncadd %s2758_s16, %s1379_s24  ;;  %p2767_p12 = scmp.ne.s32.totalorder %s1476_s22, 0  ;;  %s1483_s19 = smul.u32 56, %s1665_s13 }
 0x1c9   : > { %s1385_s26 = sshll.u32 %s2263_s7, 4  ;;  %s1480_s21 = sshll.u32 %s2914_s17, 7  ;;  %s2777_s26 = int_to_ptr.vmem [resolvable:$true] %s1385_s26 }
 0x1ca   : > { %s1383_s29 = scalar_lea.hbm %s2821_s2, %s1483_s19  ;;  %s1543_s3 = sshra.s32 %s2777_s26, 4  ;;  %s1544_s3 = int_to_ptr.vmem [resolvable:$true] %s1543_s3 }
 0x1cb   : > { %s1387_s30 = sshll.u32 %s1383_s29, 4  ;;  %s1545_s4 = sshrl.u32 %s1480_s21, 4  ;;  %s2779_s30 = int_to_ptr.hbm [resolvable:$true] %s1387_s30 }
 0x1cc   : > { %s1550_s5 = scalar_lea.vmem %s1544_s3, %s1545_s4  ;;  %s1626_s13 = smov [#allocation2]  }
 0x1cd   : > { %p1551_p13 = scmp.ne.s32.totalorder %s1544_s3, %s1550_s5  ;;  %s1554_s6 = scalar_lea.vmem %s1626_s13, 112 }
 0x1ce   : > { %p1556_p2 = scmp.lt.s32.totalorder %s1554_s6, %s1550_s5 }
 0x1cf   : > { %p1552_p0 = pnand %p1551_p13, %p2767_p12 }
 0x1d1   : > { %p1553_p1 = pneg %p1552_p0 }
 0x1d3   : > { %p1558_p3 = pnand %p1556_p2, %p1553_p1 }
 0x1d5   : > { %1561 = shalt.err (!%p1558_p3)
}
 0x1d6   : > { %s1562_s7 = sshra.s32 %s2779_s30, 4  ;;  %s1573_s23 = scalar_lea.hbm %s2821_s2, 200  ;;  %s1563_s7 = int_to_ptr.hbm [resolvable:$true] %s1562_s7 }
 0x1d7   : > { %s1569_s8 = scalar_lea.hbm %s1563_s7, %s1545_s4  ;;  %p1574_p8 = scmp.lt.s32.totalorder %s1563_s7, %s2821_s2 }
 0x1d8   : > { %p1570_p4 = scmp.ne.s32.totalorder %s1563_s7, %s1569_s8  ;;  %p1575_p9 = scmp.lt.s32.totalorder %s1573_s23, %s1569_s8 }
 0x1da   : > { %p1571_p5 = pnand %p1570_p4, %p2767_p12  ;;  %p1576_p10 = por %p1575_p9, %p1574_p8 }
 0x1dc   : > { %p1572_p7 = pneg %p1571_p5 }
 0x1de   : > { %p1577_p11 = pnand %p1576_p10, %p1572_p7 }
 0x1e0   : > { %1580 = shalt.err (!%p1577_p11)
}
 0x1e1   : > { %s1627_s27 = smov 128   ;;  %s1628_s28 = smov 8  }
 0x1e2   : > { %1393 = dma.vmem_to_hbm [thread:$0]  (%p2767_p12), %s2777_s26, %s1480_s21, %s2779_s30, %s2758_s16, %s1627_s27, %s1627_s27, %s1628_s28  }
 0x1e3 PF: > { %p1490_p13 = scmp.ge.s32.totalorder %s1616_s12, 2  ;;  %s1402_s29 = sand.u32 1, %s1604_s9  }
 0x1e4   : > { %s1403_s3 = scalar_lea.sflag [#allocation3], %s1402_s29 }
 0x1e5   : > { %p1487_p0 = pnand %p1490_p13, %p1686_p6 }
 0x1e7   : > { %p1488_p1 = pneg %p1487_p0 }
 0x1e9   : > { %1599 = dma.done.wait (%p1488_p1), %s1403_s3, 896  }
 0x1ea   : > { %1601 = vsyncadd (%p1488_p1), %s1403_s3, 4294966400  ;;  %p12_p2 = scmp.ge.s32.totalorder %s1669_s15, 6   ;;  %s2909_s9 = smov %s1608_s10 }
 0x1eb   : > { %s2910_s10 = smov %s1612_s11  ;;  %s2911_s11 = smov %s1680_s18 }
 0x1ec   : > { %s2912_s12 = smov %s1669_s15  ;;  %14 = sbr.rel (!%p12_p2) target bundleno = 3 (0x3), region = 63 }
 0x1f1   :  { %1409 = vsyncpa [#allocation3], 1 }
 0x1f2   :  { %1411 = vsyncpa [#allocation3 + $0x1], 1 }

</bundles_post_ra>
